<compile_context>
chip_gen: v7x
topology: tpu7x:2x2x1
jax: 0.10.0
libtpu: 0.0.40
codegen_flags: <defaults>
</compile_context>

<pallas_src>
import functools

import jax
import jax.numpy as jnp
from jax.experimental import pallas as pl
from jax.experimental.pallas import tpu as pltpu


def _round_up(x, m):
    return ((x + m - 1) // m) * m


# ----------------------------------------------------------------------------
# Kernel: attention step + fused LSTMCell for one batch tile resident in VMEM.
# ----------------------------------------------------------------------------
def attention_cell_kernel(
    h_ref, c_ref, bH_ref, eh_ref,            # activations
    wi2h_ref,                                 # [I, Hp]        bf16 (i2h.weight.T, cols padded)
    wh2h_ref, bh2h_ref,                       # [Hp, Hp] bf16, [1, Hp] f32
    wscore_ref,                               # [1, Hp]        f32  (score.weight row, padded)
    wg_ref,                                   # [I+E+Hp, 4Hp]  bf16 (fused LSTM weight)
    bg_ref,                                   # [1, 4Hp]       f32  (b_ih + b_hh, padded)
    h_out, c_out, alpha_out, ctx_out,         # outputs
    *, act_dtype, fuse_gates,
):
    h = h_ref[...]                            # [TB, Hp]   f32
    c = c_ref[...]                            # [TB, Hp]   f32
    bH = bH_ref[...]                          # [TB, T, I] f32 (single copy of batch_H)
    eh = eh_ref[...]                          # [TB, E+Hp] bf16 ([char_emb, h])

    TB, T, I = bH.shape
    Hp = h.shape[-1]
    wdt = wg_ref.dtype

    # ---- batch_H_proj = i2h(batch_H): single f32 copy, cast to bf16 in-kernel ----
    bH2 = bH.reshape(TB * T, I).astype(wdt)
    bH_proj = jnp.dot(bH2, wi2h_ref[...],
                      preferred_element_type=jnp.float32).reshape(TB, T, Hp)

    # ---- prev_hidden_proj = h2h(h) : [TB, Hp] ------------------------------------
    h_proj = (jnp.dot(h.astype(wdt), wh2h_ref[...],
                      preferred_element_type=jnp.float32) + bh2h_ref[...])

    # ---- e = score(tanh(...)) as VPU mul + lane reduce : [TB, T] -----------------
    s = jnp.tanh((bH_proj + h_proj[:, None, :]).astype(act_dtype))    # [TB, T, Hp]
    e = jnp.sum(s * wscore_ref[...], axis=-1)                         # f32 [TB, T]

    # ---- alpha = softmax(e) over T (lane-dense [TB, T]) --------------------------
    m = jnp.max(e, axis=-1, keepdims=True)
    ex = jnp.exp(e - m)
    denom = jnp.sum(ex, axis=-1, keepdims=True)
    alpha = ex * pl.reciprocal(denom, approx=True)
    alpha_out[...] = alpha

    # ---- context = sum_t alpha[:, t] * batch_H[:, t, :] (f32) --------------------
    context = jnp.sum(alpha[:, :, None] * bH, axis=1)                 # [TB, I]
    ctx_out[...] = context

    # ---- LSTMCell([context, emb], (h, c)) ----------------------------------------
    if fuse_gates:
        # single MXU pass over the fused [I+E+Hp, 4Hp] weight
        xg = jnp.concatenate([context.astype(wdt), eh], axis=-1)      # [TB, I+E+Hp]
        gates = jnp.dot(xg, wg_ref[...], preferred_element_type=jnp.float32)
    else:
        # fallback: two dots against row-slices of the same fused weight
        wg = wg_ref[...]
        gates = (jnp.dot(context.astype(wdt), wg[:I],
                         preferred_element_type=jnp.float32)
                 + jnp.dot(eh, wg[I:], preferred_element_type=jnp.float32))
    gates = (gates + bg_ref[...]).astype(act_dtype)                   # [TB, 4Hp]

    # Hp is a multiple of 128, so every gate slice is vreg-aligned (no lane shuffles).
    i_g = jax.nn.sigmoid(gates[:, 0 * Hp:1 * Hp])
    f_g = jax.nn.sigmoid(gates[:, 1 * Hp:2 * Hp])
    g_g = jnp.tanh(gates[:, 2 * Hp:3 * Hp])
    o_g = jax.nn.sigmoid(gates[:, 3 * Hp:4 * Hp])

    c_new = f_g.astype(jnp.float32) * c + (i_g * g_g).astype(jnp.float32)
    h_new = o_g.astype(jnp.float32) * jnp.tanh(c_new)

    h_out[...] = h_new
    c_out[...] = c_new


# ----------------------------------------------------------------------------
# One-time parameter prep: pad hidden dim to 128 lanes, fuse LSTM weights, cast.
# ----------------------------------------------------------------------------
def prepare_params(params, weight_dtype=jnp.bfloat16):
    I, H = params["w_i2h_T"].shape
    Hp = _round_up(H, 128)

    def pad_last(x, target):
        return jnp.pad(x, [(0, 0)] * (x.ndim - 1) + [(0, target - x.shape[-1])])

    def pad_gate_cols(w):
        # [..., 4H] -> [..., 4*Hp]: each i/f/g/o block gets its own 128-aligned slot.
        return jnp.concatenate(
            [pad_last(w[..., g * H:(g + 1) * H], Hp) for g in range(4)], axis=-1)

    # fused LSTM weight rows: [context (I) | char_emb (E) | hidden (Hp)]
    w_gates = jnp.concatenate(
        [pad_gate_cols(params["w_ih_c_T"]),
         pad_gate_cols(params["w_ih_e_T"]),
         jnp.pad(pad_gate_cols(params["w_hh_T"]), ((0, Hp - H), (0, 0)))],
        axis=0)                                                        # [I+E+Hp, 4Hp]

    return {
        "w_i2h": pad_last(params["w_i2h_T"], Hp).astype(weight_dtype),             # [I, Hp]
        "w_h2h": jnp.pad(params["w_h2h_T"],
                         ((0, Hp - H), (0, Hp - H))).astype(weight_dtype),          # [Hp, Hp]
        "b_h2h": pad_last(params["b_h2h"], Hp).astype(jnp.float32),                 # [1, Hp]
        "w_score_row": pad_last(params["w_score_T"].reshape(1, H),
                                Hp).astype(jnp.float32),                            # [1, Hp]
        "w_gates": w_gates.astype(weight_dtype),                                    # [I+E+Hp, 4Hp]
        "b_gates": pad_gate_cols(params["b_ih"]
                                 + params["b_hh"]).astype(jnp.float32),             # [1, 4Hp]
    }


def _choose_batch_tile(T, I, E, Hp, vmem_budget):
    """Largest batch-row tile (multiple of 8) fitting the VMEM budget."""
    per_row = (
        2 * T * I * 4               # batch_H tile (f32, double-buffered)
        + 2 * (E + Hp) * 2          # [emb, h] bf16 (double-buffered)
        + 2 * 2 * Hp * 4            # h, c inputs (double-buffered)
        + 2 * (2 * Hp + T + I) * 4  # h, c, alpha, ctx outputs (double-buffered)
        + 2 * T * Hp * 4            # bH_proj / tanh intermediate
        + (I + E + Hp) * 2          # fused gate operand
        + 4 * Hp * 4                # gate pre-activations
    )
    tb = max(int(vmem_budget), 8 * per_row) // per_row
    return max(8, (tb // 8) * 8)


def _default_act_dtype():
    # bf16 activations relieve EUP/VPU on v6e/v7x; v5e (and older) has no bf16
    # VPU/EUP path, so stay f32 there.
    try:
        kind = jax.devices()[0].device_kind.lower()
    except Exception:
        return jnp.float32
    return jnp.bfloat16 if ("v6" in kind or "v7" in kind) else jnp.float32


# ----------------------------------------------------------------------------
# Wrapper
# ----------------------------------------------------------------------------
def attention_cell(prev_hidden, batch_H, char_embeddings, prepared, *,
                   act_dtype=jnp.float32, fuse_gates=True,
                   vmem_limit_bytes=48 << 20):
    h, c = prev_hidden
    B, T, I = batch_H.shape
    H = h.shape[1]
    E = char_embeddings.shape[1]
    Hp = prepared["w_h2h"].shape[0]
    wdt = prepared["w_i2h"].dtype

    # --- batch tiling: VMEM-budgeted, >=8 sublanes, >=2 blocks for large B -------
    wbytes = sum(int(v.size) * v.dtype.itemsize for v in prepared.values())
    budget = (3 * vmem_limit_bytes) // 4 - 2 * wbytes      # weights double-buffered
    TB = _choose_batch_tile(T, I, E, Hp, budget)
    B8 = _round_up(B, 8)
    TB = min(TB, B8)
    if B8 > 8:
        # keep >= 2 "parallel" grid blocks so both v7x TensorCores get work
        TB = min(TB, _round_up(pl.cdiv(B8, 2), 8))
    Bp = _round_up(B, TB)
    nb = Bp // TB

    # --- padded operands (batch rows -> Bp, hidden lanes -> Hp) ------------------
    h_hp = jnp.pad(h, ((0, 0), (0, Hp - H)))
    c_hp = jnp.pad(c, ((0, 0), (0, Hp - H)))
    eh = jnp.concatenate([char_embeddings, h_hp], axis=1).astype(wdt)   # [B, E+Hp]

    def pad_rows(x):
        return jnp.pad(x, ((0, Bp - B),) + ((0, 0),) * (x.ndim - 1))

    h_p, c_p, bH_p, eh_p = (pad_rows(x) for x in (h_hp, c_hp, batch_H, eh))

    # Weights/biases use constant index maps (resident across the grid). On a
    # VMEM-tight v7x they could additionally be single-buffered via
    # pipeline_mode=pl.Buffered(1); kept default-buffered here for portability.
    in_specs = [
        pl.BlockSpec((TB, Hp), lambda i: (i, 0)),               # h
        pl.BlockSpec((TB, Hp), lambda i: (i, 0)),               # c
        pl.BlockSpec((TB, T, I), lambda i: (i, 0, 0)),          # batch_H (single f32 copy)
        pl.BlockSpec((TB, E + Hp), lambda i: (i, 0)),           # [emb, h] bf16
        pl.BlockSpec((I, Hp), lambda i: (0, 0)),                # w_i2h
        pl.BlockSpec((Hp, Hp), lambda i: (0, 0)),               # w_h2h
        pl.BlockSpec((1, Hp), lambda i: (0, 0)),                # b_h2h
        pl.BlockSpec((1, Hp), lambda i: (0, 0)),                # w_score_row
        pl.BlockSpec((I + E + Hp, 4 * Hp), lambda i: (0, 0)),   # w_gates (fused)
        pl.BlockSpec((1, 4 * Hp), lambda i: (0, 0)),            # b_gates
    ]
    out_specs = (
        pl.BlockSpec((TB, Hp), lambda i: (i, 0)),               # h_new (lane-dense)
        pl.BlockSpec((TB, Hp), lambda i: (i, 0)),               # c_new (lane-dense)
        pl.BlockSpec((TB, T), lambda i: (i, 0)),                # alpha
        pl.BlockSpec((TB, I), lambda i: (i, 0)),                # context
    )
    out_shapes = (
        jax.ShapeDtypeStruct((Bp, Hp), jnp.float32),
        jax.ShapeDtypeStruct((Bp, Hp), jnp.float32),
        jax.ShapeDtypeStruct((Bp, T), jnp.float32),
        jax.ShapeDtypeStruct((Bp, I), jnp.float32),
    )

    h_new, c_new, alpha, context = pl.pallas_call(
        functools.partial(attention_cell_kernel,
                          act_dtype=act_dtype, fuse_gates=fuse_gates),
        out_shape=out_shapes,
        grid=(nb,),
        in_specs=in_specs,
        out_specs=out_specs,
        compiler_params=pltpu.CompilerParams(
            dimension_semantics=("parallel",),
            vmem_limit_bytes=vmem_limit_bytes),
    )(h_p, c_p, bH_p, eh_p,
      prepared["w_i2h"], prepared["w_h2h"], prepared["b_h2h"],
      prepared["w_score_row"], prepared["w_gates"], prepared["b_gates"])

    # un-pad; PyTorch returns alpha as [B, T, 1]
    return ((h_new[:B, :H], c_new[:B, :H]), alpha[:B, :, None], context[:B])


# ----------------------------------------------------------------------------
# Pure-JAX reference (same padded / bf16-rounded params -> apples-to-apples)
# ----------------------------------------------------------------------------
def attention_cell_ref(prev_hidden, batch_H, char_embeddings, prepared):
    h, c = prev_hidden
    B, T, I = batch_H.shape
    H = h.shape[1]
    Hp = prepared["w_h2h"].shape[0]
    wdt = prepared["w_i2h"].dtype
    f32 = jnp.float32

    hp = jnp.pad(h, ((0, 0), (0, Hp - H)))
    cp = jnp.pad(c, ((0, 0), (0, Hp - H)))

    bH_proj = jnp.dot(batch_H.reshape(B * T, I).astype(wdt), prepared["w_i2h"],
                      preferred_element_type=f32).reshape(B, T, Hp)
    h_proj = jnp.dot(hp.astype(wdt), prepared["w_h2h"],
                     preferred_element_type=f32) + prepared["b_h2h"]
    s = jnp.tanh(bH_proj + h_proj[:, None, :])
    e = jnp.sum(s * prepared["w_score_row"], axis=-1)                 # [B, T]
    alpha = jax.nn.softmax(e, axis=-1)
    context = jnp.einsum("bt,bti->bi", alpha, batch_H)

    xg = jnp.concatenate([context.astype(wdt), char_embeddings.astype(wdt),
                          hp.astype(wdt)], axis=-1)                   # [B, I+E+Hp]
    gates = (jnp.dot(xg, prepared["w_gates"], preferred_element_type=f32)
             + prepared["b_gates"])
    i_g = jax.nn.sigmoid(gates[:, :Hp])
    f_g = jax.nn.sigmoid(gates[:, Hp:2 * Hp])
    g_g = jnp.tanh(gates[:, 2 * Hp:3 * Hp])
    o_g = jax.nn.sigmoid(gates[:, 3 * Hp:])
    c_new = f_g * cp + i_g * g_g
    h_new = o_g * jnp.tanh(c_new)
    return (h_new[:, :H], c_new[:, :H]), alpha[:, :, None], context


def init_params(key, input_size, hidden_size, num_embeddings):
    ks = jax.random.split(key, 8)

    def rnd(k, shape, scale=0.1):
        return (scale * jax.random.normal(k, shape)).astype(jnp.float32)

    I, H, E = input_size, hidden_size, num_embeddings
    return {
        # nn.Linear stores weight as [out, in]; we keep the transposed [in, out]
        "w_i2h_T":  rnd(ks[0], (I, H)),
        "w_h2h_T":  rnd(ks[1], (H, H)),
        "b_h2h":    rnd(ks[2], (1, H)),
        "w_score_T": rnd(ks[3], (H, 1)),
        # nn.LSTMCell: weight_ih [4H, I+E] -> split & transpose (gate order i,f,g,o)
        "w_ih_c_T": rnd(ks[4], (I, 4 * H)),
        "w_ih_e_T": rnd(ks[5], (E, 4 * H)),
        "b_ih":     rnd(ks[6], (1, 4 * H)),
        "w_hh_T":   rnd(ks[7], (H, 4 * H)),
        "b_hh":     jnp.zeros((1, 4 * H), jnp.float32),
    }


if __name__ == "__main__":
    B, T, I, H, E = 2, 8, 32, 32, 4   # batch, seq, input_size, hidden_size, num_embeddings

    key = jax.random.PRNGKey(0)
    k_h, k_c, k_bH, k_emb, k_p = jax.random.split(key, 5)

    prev_h = jax.random.normal(k_h, (B, H), jnp.float32)
    prev_c = jax.random.normal(k_c, (B, H), jnp.float32)
    batch_H = jax.random.normal(k_bH, (B, T, I), jnp.float32)
    char_emb = jax.random.normal(k_emb, (B, E), jnp.float32)
    params = init_params(k_p, I, H, E)
    prepared = prepare_params(params)
    act_dtype = _default_act_dtype()

    try:
        out = attention_cell((prev_h, prev_c), batch_H, char_emb, prepared,
                             act_dtype=act_dtype, fuse_gates=True)
        jax.block_until_ready(out)
    except Exception:
        # portability fallback for Mosaic builds without unaligned minor-dim concat
        out = attention_cell((prev_h, prev_c), batch_H, char_emb, prepared,
                             act_dtype=act_dtype, fuse_gates=False)
        jax.block_until_ready(out)
    (h_new, c_new), alpha, context = out

    # correctness check against a pure-JAX reference (same padded/bf16 params)
    (h_ref, c_ref), a_ref, ctx_ref = attention_cell_ref(
        (prev_h, prev_c), batch_H, char_emb, prepared)
    for name, got, ref in (("h", h_new, h_ref), ("c", c_new, c_ref),
                           ("alpha", alpha, a_ref), ("context", context, ctx_ref)):
        assert got.shape == ref.shape, f"shape mismatch: {name}"
        assert jnp.allclose(got, ref, atol=1e-2, rtol=1e-2), f"mismatch vs reference: {name}"

    print("KERNEL_OK")
</pallas_src>

<mosaic_0001>
module attributes {stable_mosaic.version = 11 : i64} {
  func.func @attention_cell_kernel(%arg0: i32, %arg1: memref<8x128xf32, #tpu.memory_space<vmem>>, %arg2: memref<8x128xf32, #tpu.memory_space<vmem>>, %arg3: memref<8x8x32xf32, #tpu.memory_space<vmem>>, %arg4: memref<8x132xbf16, #tpu.memory_space<vmem>>, %arg5: memref<32x128xbf16, #tpu.memory_space<vmem>>, %arg6: memref<128x128xbf16, #tpu.memory_space<vmem>>, %arg7: memref<1x128xf32, #tpu.memory_space<vmem>>, %arg8: memref<1x128xf32, #tpu.memory_space<vmem>>, %arg9: memref<164x512xbf16, #tpu.memory_space<vmem>>, %arg10: memref<1x512xf32, #tpu.memory_space<vmem>>, %arg11: memref<8x128xf32, #tpu.memory_space<vmem>>, %arg12: memref<8x128xf32, #tpu.memory_space<vmem>>, %arg13: memref<8x8xf32, #tpu.memory_space<vmem>>, %arg14: memref<8x32xf32, #tpu.memory_space<vmem>>) attributes {dimension_semantics = [#tpu.dimension_semantics<parallel>], iteration_bounds = array<i64: 1>, scalar_prefetch = 0 : i64, scratch_operands = 0 : i64, tpu.core_type = #tpu.core_type<tc>, window_params = [{transform_indices = @transform_0, window_bounds = array<i64: 8, 128>}, {transform_indices = @transform_1, window_bounds = array<i64: 8, 128>}, {transform_indices = @transform_2, window_bounds = array<i64: 8, 8, 32>}, {transform_indices = @transform_3, window_bounds = array<i64: 8, 132>}, {pipeline_mode = #tpu.pipeline_mode<synchronous>, transform_indices = @transform_4, window_bounds = array<i64: 32, 128>}, {pipeline_mode = #tpu.pipeline_mode<synchronous>, transform_indices = @transform_5, window_bounds = array<i64: 128, 128>}, {pipeline_mode = #tpu.pipeline_mode<synchronous>, transform_indices = @transform_6, window_bounds = array<i64: 1, 128>}, {pipeline_mode = #tpu.pipeline_mode<synchronous>, transform_indices = @transform_7, window_bounds = array<i64: 1, 128>}, {pipeline_mode = #tpu.pipeline_mode<synchronous>, transform_indices = @transform_8, window_bounds = array<i64: 164, 512>}, {pipeline_mode = #tpu.pipeline_mode<synchronous>, transform_indices = @transform_9, window_bounds = array<i64: 1, 512>}, {transform_indices = @transform_10, window_bounds = array<i64: 8, 128>}, {transform_indices = @transform_11, window_bounds = array<i64: 8, 128>}, {transform_indices = @transform_12, window_bounds = array<i64: 8, 8>}, {transform_indices = @transform_13, window_bounds = array<i64: 8, 32>}]} {
    %c0 = arith.constant 0 : index
    %c0_0 = arith.constant 0 : index
    %0 = vector.load %arg1[%c0, %c0_0] : memref<8x128xf32, #tpu.memory_space<vmem>>, vector<8x128xf32>
    %c0_1 = arith.constant 0 : index
    %c0_2 = arith.constant 0 : index
    %1 = vector.load %arg2[%c0_1, %c0_2] : memref<8x128xf32, #tpu.memory_space<vmem>>, vector<8x128xf32>
    %c0_3 = arith.constant 0 : index
    %c0_4 = arith.constant 0 : index
    %c0_5 = arith.constant 0 : index
    %2 = vector.load %arg3[%c0_3, %c0_4, %c0_5] : memref<8x8x32xf32, #tpu.memory_space<vmem>>, vector<8x8x32xf32>
    %c0_6 = arith.constant 0 : index
    %c0_7 = arith.constant 0 : index
    %3 = vector.load %arg4[%c0_6, %c0_7] : memref<8x132xbf16, #tpu.memory_space<vmem>>, vector<8x132xbf16>
    %4 = vector.shape_cast %2 : vector<8x8x32xf32> to vector<64x32xf32>
    %5 = arith.truncf %4 : vector<64x32xf32> to vector<64x32xbf16>
    %c0_8 = arith.constant 0 : index
    %c0_9 = arith.constant 0 : index
    %6 = vector.load %arg5[%c0_8, %c0_9] : memref<32x128xbf16, #tpu.memory_space<vmem>>, vector<32x128xbf16>
    %cst = arith.constant dense<0.000000e+00> : vector<64x128xf32>
    %7 = tpu.matmul %5, %6, %cst {dimension_numbers = #tpu.dot_dimension_numbers<[1], [0], [0], [1], [0, 0, 1, 1], [], []>} : vector<64x32xbf16>, vector<32x128xbf16>, vector<64x128xf32> -> vector<64x128xf32>
    %8 = vector.shape_cast %7 : vector<64x128xf32> to vector<8x8x128xf32>
    %9 = arith.truncf %0 : vector<8x128xf32> to vector<8x128xbf16>
    %c0_10 = arith.constant 0 : index
    %c0_11 = arith.constant 0 : index
    %10 = vector.load %arg6[%c0_10, %c0_11] : memref<128x128xbf16, #tpu.memory_space<vmem>>, vector<128x128xbf16>
    %cst_12 = arith.constant dense<0.000000e+00> : vector<8x128xf32>
    %11 = tpu.matmul %9, %10, %cst_12 {dimension_numbers = #tpu.dot_dimension_numbers<[1], [0], [0], [1], [0, 0, 1, 1], [], []>} : vector<8x128xbf16>, vector<128x128xbf16>, vector<8x128xf32> -> vector<8x128xf32>
    %c0_13 = arith.constant 0 : index
    %c0_14 = arith.constant 0 : index
    %12 = vector.load %arg7[%c0_13, %c0_14] : memref<1x128xf32, #tpu.memory_space<vmem>>, vector<1x128xf32>
    %13 = vector.broadcast %12 : vector<1x128xf32> to vector<8x128xf32>
    %14 = arith.addf %11, %13 : vector<8x128xf32>
    %15 = vector.shape_cast %14 : vector<8x128xf32> to vector<8x1x128xf32>
    %16 = vector.broadcast %15 : vector<8x1x128xf32> to vector<8x8x128xf32>
    %17 = arith.addf %8, %16 : vector<8x8x128xf32>
    %18 = math.tanh %17 : vector<8x8x128xf32>
    %c0_15 = arith.constant 0 : index
    %c0_16 = arith.constant 0 : index
    %19 = vector.load %arg8[%c0_15, %c0_16] : memref<1x128xf32, #tpu.memory_space<vmem>>, vector<1x128xf32>
    %20 = vector.shape_cast %19 : vector<1x128xf32> to vector<1x1x128xf32>
    %21 = vector.broadcast %20 : vector<1x1x128xf32> to vector<8x8x128xf32>
    %22 = arith.mulf %18, %21 : vector<8x8x128xf32>
    %cst_17 = arith.constant dense<0.000000e+00> : vector<8x8xf32>
    %23 = vector.multi_reduction <add>, %22, %cst_17 [2] : vector<8x8x128xf32> to vector<8x8xf32>
    %cst_18 = arith.constant dense<0xFF800000> : vector<8xf32>
    %24 = vector.multi_reduction <maximumf>, %23, %cst_18 [1] : vector<8x8xf32> to vector<8xf32>
    %25 = vector.shape_cast %24 : vector<8xf32> to vector<8x1xf32>
    %26 = vector.broadcast %25 : vector<8x1xf32> to vector<8x8xf32>
    %27 = arith.subf %23, %26 : vector<8x8xf32>
    %28 = math.exp %27 : vector<8x8xf32>
    %cst_19 = arith.constant dense<0.000000e+00> : vector<8xf32>
    %29 = vector.multi_reduction <add>, %28, %cst_19 [1] : vector<8x8xf32> to vector<8xf32>
    %30 = vector.shape_cast %29 : vector<8xf32> to vector<8x1xf32>
    %31 = tpu.reciprocal %30 {approx = true} : vector<8x1xf32> -> vector<8x1xf32>
    %32 = vector.broadcast %31 : vector<8x1xf32> to vector<8x8xf32>
    %33 = arith.mulf %28, %32 : vector<8x8xf32>
    %c0_20 = arith.constant 0 : index
    %c0_21 = arith.constant 0 : index
    %34 = vector.load %arg13[%c0_20, %c0_21] : memref<8x8xf32, #tpu.memory_space<vmem>>, vector<8x8xf32>
    tpu.vector_store %arg13[%c0_20, %c0_21], %33 {strides = array<i32>} : memref<8x8xf32, #tpu.memory_space<vmem>>, vector<8x8xf32>,
    %35 = vector.shape_cast %33 : vector<8x8xf32> to vector<8x8x1xf32>
    %36 = vector.broadcast %35 : vector<8x8x1xf32> to vector<8x8x32xf32>
    %37 = arith.mulf %36, %2 : vector<8x8x32xf32>
    %cst_22 = arith.constant dense<0.000000e+00> : vector<8x32xf32>
    %38 = vector.multi_reduction <add>, %37, %cst_22 [1] : vector<8x8x32xf32> to vector<8x32xf32>
    %c0_23 = arith.constant 0 : index
    %c0_24 = arith.constant 0 : index
    %39 = vector.load %arg14[%c0_23, %c0_24] : memref<8x32xf32, #tpu.memory_space<vmem>>, vector<8x32xf32>
    tpu.vector_store %arg14[%c0_23, %c0_24], %38 {strides = array<i32>} : memref<8x32xf32, #tpu.memory_space<vmem>>, vector<8x32xf32>,
    %40 = arith.truncf %38 : vector<8x32xf32> to vector<8x32xbf16>
    %41 = tpu.concatenate %40, %3 in 1 : vector<8x32xbf16>, vector<8x132xbf16> -> vector<8x164xbf16>
    %c0_25 = arith.constant 0 : index
    %c0_26 = arith.constant 0 : index
    %42 = vector.load %arg9[%c0_25, %c0_26] : memref<164x512xbf16, #tpu.memory_space<vmem>>, vector<164x512xbf16>
    %cst_27 = arith.constant dense<0.000000e+00> : vector<8x512xf32>
    %43 = tpu.matmul %41, %42, %cst_27 {dimension_numbers = #tpu.dot_dimension_numbers<[1], [0], [0], [1], [0, 0, 1, 1], [], []>} : vector<8x164xbf16>, vector<164x512xbf16>, vector<8x512xf32> -> vector<8x512xf32>
    %c0_28 = arith.constant 0 : index
    %c0_29 = arith.constant 0 : index
    %44 = vector.load %arg10[%c0_28, %c0_29] : memref<1x512xf32, #tpu.memory_space<vmem>>, vector<1x512xf32>
    %45 = vector.broadcast %44 : vector<1x512xf32> to vector<8x512xf32>
    %46 = arith.addf %43, %45 : vector<8x512xf32>
    %47 = vector.extract_strided_slice %46 {offsets = [0, 0], sizes = [8, 128], strides = [1, 1]} : vector<8x512xf32> to vector<8x128xf32>
    %48 = arith.negf %47 : vector<8x128xf32>
    %49 = math.exp %48 : vector<8x128xf32>
    %cst_30 = arith.constant 1.000000e+00 : f32
    %50 = vector.broadcast %cst_30 : f32 to vector<8x128xf32>
    %51 = arith.addf %50, %49 : vector<8x128xf32>
    %52 = arith.divf %50, %51 : vector<8x128xf32>
    %53 = vector.extract_strided_slice %46 {offsets = [0, 128], sizes = [8, 128], strides = [1, 1]} : vector<8x512xf32> to vector<8x128xf32>
    %54 = arith.negf %53 : vector<8x128xf32>
    %55 = math.exp %54 : vector<8x128xf32>
    %cst_31 = arith.constant 1.000000e+00 : f32
    %56 = vector.broadcast %cst_31 : f32 to vector<8x128xf32>
    %57 = arith.addf %56, %55 : vector<8x128xf32>
    %58 = arith.divf %56, %57 : vector<8x128xf32>
    %59 = vector.extract_strided_slice %46 {offsets = [0, 256], sizes = [8, 128], strides = [1, 1]} : vector<8x512xf32> to vector<8x128xf32>
    %60 = math.tanh %59 : vector<8x128xf32>
    %61 = vector.extract_strided_slice %46 {offsets = [0, 384], sizes = [8, 128], strides = [1, 1]} : vector<8x512xf32> to vector<8x128xf32>
    %62 = arith.negf %61 : vector<8x128xf32>
    %63 = math.exp %62 : vector<8x128xf32>
    %cst_32 = arith.constant 1.000000e+00 : f32
    %64 = vector.broadcast %cst_32 : f32 to vector<8x128xf32>
    %65 = arith.addf %64, %63 : vector<8x128xf32>
    %66 = arith.divf %64, %65 : vector<8x128xf32>
    %67 = arith.mulf %58, %1 : vector<8x128xf32>
    %68 = arith.mulf %52, %60 : vector<8x128xf32>
    %69 = arith.addf %67, %68 : vector<8x128xf32>
    %70 = math.tanh %69 : vector<8x128xf32>
    %71 = arith.mulf %66, %70 : vector<8x128xf32>
    %c0_33 = arith.constant 0 : index
    %c0_34 = arith.constant 0 : index
    %72 = vector.load %arg11[%c0_33, %c0_34] : memref<8x128xf32, #tpu.memory_space<vmem>>, vector<8x128xf32>
    tpu.vector_store %arg11[%c0_33, %c0_34], %71 {strides = array<i32>} : memref<8x128xf32, #tpu.memory_space<vmem>>, vector<8x128xf32>,
    %c0_35 = arith.constant 0 : index
    %c0_36 = arith.constant 0 : index
    %73 = vector.load %arg12[%c0_35, %c0_36] : memref<8x128xf32, #tpu.memory_space<vmem>>, vector<8x128xf32>
    tpu.vector_store %arg12[%c0_35, %c0_36], %69 {strides = array<i32>} : memref<8x128xf32, #tpu.memory_space<vmem>>, vector<8x128xf32>,
    return
  }
  func.func @transform_0(%arg0: i32) -> (i32, i32) {
    %c0_i32 = arith.constant 0 : i32
    %c0_i32_0 = arith.constant 0 : i32
    return %arg0, %c0_i32 : i32, i32
  }
  func.func @transform_1(%arg0: i32) -> (i32, i32) {
    %c0_i32 = arith.constant 0 : i32
    %c0_i32_0 = arith.constant 0 : i32
    return %arg0, %c0_i32 : i32, i32
  }
  func.func @transform_2(%arg0: i32) -> (i32, i32, i32) {
    %c0_i32 = arith.constant 0 : i32
    %c0_i32_0 = arith.constant 0 : i32
    %c0_i32_1 = arith.constant 0 : i32
    return %arg0, %c0_i32, %c0_i32_0 : i32, i32, i32
  }
  func.func @transform_3(%arg0: i32) -> (i32, i32) {
    %c0_i32 = arith.constant 0 : i32
    %c0_i32_0 = arith.constant 0 : i32
    return %arg0, %c0_i32 : i32, i32
  }
  func.func @transform_4(%arg0: i32) -> (i32, i32) {
    %c0_i32 = arith.constant 0 : i32
    %c0_i32_0 = arith.constant 0 : i32
    %c0_i32_1 = arith.constant 0 : i32
    return %c0_i32, %c0_i32_0 : i32, i32
  }
  func.func @transform_5(%arg0: i32) -> (i32, i32) {
    %c0_i32 = arith.constant 0 : i32
    %c0_i32_0 = arith.constant 0 : i32
    %c0_i32_1 = arith.constant 0 : i32
    return %c0_i32, %c0_i32_0 : i32, i32
  }
  func.func @transform_6(%arg0: i32) -> (i32, i32) {
    %c0_i32 = arith.constant 0 : i32
    %c0_i32_0 = arith.constant 0 : i32
    %c0_i32_1 = arith.constant 0 : i32
    return %c0_i32, %c0_i32_0 : i32, i32
  }
  func.func @transform_7(%arg0: i32) -> (i32, i32) {
    %c0_i32 = arith.constant 0 : i32
    %c0_i32_0 = arith.constant 0 : i32
    %c0_i32_1 = arith.constant 0 : i32
    return %c0_i32, %c0_i32_0 : i32, i32
  }
  func.func @transform_8(%arg0: i32) -> (i32, i32) {
    %c0_i32 = arith.constant 0 : i32
    %c0_i32_0 = arith.constant 0 : i32
    %c0_i32_1 = arith.constant 0 : i32
    return %c0_i32, %c0_i32_0 : i32, i32
  }
  func.func @transform_9(%arg0: i32) -> (i32, i32) {
    %c0_i32 = arith.constant 0 : i32
    %c0_i32_0 = arith.constant 0 : i32
    %c0_i32_1 = arith.constant 0 : i32
    return %c0_i32, %c0_i32_0 : i32, i32
  }
  func.func @transform_10(%arg0: i32) -> (i32, i32) {
    %c0_i32 = arith.constant 0 : i32
    %c0_i32_0 = arith.constant 0 : i32
    return %arg0, %c0_i32 : i32, i32
  }
  func.func @transform_11(%arg0: i32) -> (i32, i32) {
    %c0_i32 = arith.constant 0 : i32
    %c0_i32_0 = arith.constant 0 : i32
    return %arg0, %c0_i32 : i32, i32
  }
  func.func @transform_12(%arg0: i32) -> (i32, i32) {
    %c0_i32 = arith.constant 0 : i32
    %c0_i32_0 = arith.constant 0 : i32
    return %arg0, %c0_i32 : i32, i32
  }
  func.func @transform_13(%arg0: i32) -> (i32, i32) {
    %c0_i32 = arith.constant 0 : i32
    %c0_i32_0 = arith.constant 0 : i32
    return %arg0, %c0_i32 : i32, i32
  }
}

module attributes {stable_mosaic.version = 11 : i64} {
  func.func @attention_cell_kernel(%arg0: i32, %arg1: memref<8x128xf32, #tpu.memory_space<vmem>>, %arg2: memref<8x128xf32, #tpu.memory_space<vmem>>, %arg3: memref<8x8x32xf32, #tpu.memory_space<vmem>>, %arg4: memref<8x132xbf16, #tpu.memory_space<vmem>>, %arg5: memref<32x128xbf16, #tpu.memory_space<vmem>>, %arg6: memref<128x128xbf16, #tpu.memory_space<vmem>>, %arg7: memref<1x128xf32, #tpu.memory_space<vmem>>, %arg8: memref<1x128xf32, #tpu.memory_space<vmem>>, %arg9: memref<164x512xbf16, #tpu.memory_space<vmem>>, %arg10: memref<1x512xf32, #tpu.memory_space<vmem>>, %arg11: memref<8x128xf32, #tpu.memory_space<vmem>>, %arg12: memref<8x128xf32, #tpu.memory_space<vmem>>, %arg13: memref<8x8xf32, #tpu.memory_space<vmem>>, %arg14: memref<8x32xf32, #tpu.memory_space<vmem>>) attributes {dimension_semantics = [#tpu.dimension_semantics<parallel>], iteration_bounds = array<i64: 1>, scalar_prefetch = 0 : i64, scratch_operands = 0 : i64, tpu.core_type = #tpu.core_type<tc>, window_params = [{transform_indices = @transform_0, window_bounds = array<i64: 8, 128>}, {transform_indices = @transform_1, window_bounds = array<i64: 8, 128>}, {transform_indices = @transform_2, window_bounds = array<i64: 8, 8, 32>}, {transform_indices = @transform_3, window_bounds = array<i64: 8, 132>}, {pipeline_mode = #tpu.pipeline_mode<synchronous>, transform_indices = @transform_4, window_bounds = array<i64: 32, 128>}, {pipeline_mode = #tpu.pipeline_mode<synchronous>, transform_indices = @transform_5, window_bounds = array<i64: 128, 128>}, {pipeline_mode = #tpu.pipeline_mode<synchronous>, transform_indices = @transform_6, window_bounds = array<i64: 1, 128>}, {pipeline_mode = #tpu.pipeline_mode<synchronous>, transform_indices = @transform_7, window_bounds = array<i64: 1, 128>}, {pipeline_mode = #tpu.pipeline_mode<synchronous>, transform_indices = @transform_8, window_bounds = array<i64: 164, 512>}, {pipeline_mode = #tpu.pipeline_mode<synchronous>, transform_indices = @transform_9, window_bounds = array<i64: 1, 512>}, {transform_indices = @transform_10, window_bounds = array<i64: 8, 128>}, {transform_indices = @transform_11, window_bounds = array<i64: 8, 128>}, {transform_indices = @transform_12, window_bounds = array<i64: 8, 8>}, {transform_indices = @transform_13, window_bounds = array<i64: 8, 32>}]} {
    %c0 = arith.constant 0 : index
    %c0_0 = arith.constant 0 : index
    %0 = vector.load %arg1[%c0, %c0_0] : memref<8x128xf32, #tpu.memory_space<vmem>>, vector<8x128xf32>
    %c0_1 = arith.constant 0 : index
    %c0_2 = arith.constant 0 : index
    %1 = vector.load %arg2[%c0_1, %c0_2] : memref<8x128xf32, #tpu.memory_space<vmem>>, vector<8x128xf32>
    %c0_3 = arith.constant 0 : index
    %c0_4 = arith.constant 0 : index
    %c0_5 = arith.constant 0 : index
    %2 = vector.load %arg3[%c0_3, %c0_4, %c0_5] : memref<8x8x32xf32, #tpu.memory_space<vmem>>, vector<8x8x32xf32>
    %c0_6 = arith.constant 0 : index
    %c0_7 = arith.constant 0 : index
    %3 = vector.load %arg4[%c0_6, %c0_7] : memref<8x132xbf16, #tpu.memory_space<vmem>>, vector<8x132xbf16>
    %4 = vector.shape_cast %2 : vector<8x8x32xf32> to vector<64x32xf32>
    %5 = arith.truncf %4 : vector<64x32xf32> to vector<64x32xbf16>
    %c0_8 = arith.constant 0 : index
    %c0_9 = arith.constant 0 : index
    %6 = vector.load %arg5[%c0_8, %c0_9] : memref<32x128xbf16, #tpu.memory_space<vmem>>, vector<32x128xbf16>
    %cst = arith.constant dense<0.000000e+00> : vector<64x128xf32>
    %7 = tpu.matmul %5, %6, %cst {dimension_numbers = #tpu.dot_dimension_numbers<[1], [0], [0], [1], [0, 0, 1, 1], [], []>} : vector<64x32xbf16>, vector<32x128xbf16>, vector<64x128xf32> -> vector<64x128xf32>
    %8 = vector.shape_cast %7 : vector<64x128xf32> to vector<8x8x128xf32>
    %9 = arith.truncf %0 : vector<8x128xf32> to vector<8x128xbf16>
    %c0_10 = arith.constant 0 : index
    %c0_11 = arith.constant 0 : index
    %10 = vector.load %arg6[%c0_10, %c0_11] : memref<128x128xbf16, #tpu.memory_space<vmem>>, vector<128x128xbf16>
    %cst_12 = arith.constant dense<0.000000e+00> : vector<8x128xf32>
    %11 = tpu.matmul %9, %10, %cst_12 {dimension_numbers = #tpu.dot_dimension_numbers<[1], [0], [0], [1], [0, 0, 1, 1], [], []>} : vector<8x128xbf16>, vector<128x128xbf16>, vector<8x128xf32> -> vector<8x128xf32>
    %c0_13 = arith.constant 0 : index
    %c0_14 = arith.constant 0 : index
    %12 = vector.load %arg7[%c0_13, %c0_14] : memref<1x128xf32, #tpu.memory_space<vmem>>, vector<1x128xf32>
    %13 = vector.broadcast %12 : vector<1x128xf32> to vector<8x128xf32>
    %14 = arith.addf %11, %13 : vector<8x128xf32>
    %15 = vector.shape_cast %14 : vector<8x128xf32> to vector<8x1x128xf32>
    %16 = vector.broadcast %15 : vector<8x1x128xf32> to vector<8x8x128xf32>
    %17 = arith.addf %8, %16 : vector<8x8x128xf32>
    %18 = math.tanh %17 : vector<8x8x128xf32>
    %c0_15 = arith.constant 0 : index
    %c0_16 = arith.constant 0 : index
    %19 = vector.load %arg8[%c0_15, %c0_16] : memref<1x128xf32, #tpu.memory_space<vmem>>, vector<1x128xf32>
    %20 = vector.shape_cast %19 : vector<1x128xf32> to vector<1x1x128xf32>
    %21 = vector.broadcast %20 : vector<1x1x128xf32> to vector<8x8x128xf32>
    %22 = arith.mulf %18, %21 : vector<8x8x128xf32>
    %cst_17 = arith.constant dense<0.000000e+00> : vector<8x8xf32>
    %23 = vector.multi_reduction <add>, %22, %cst_17 [2] : vector<8x8x128xf32> to vector<8x8xf32>
    %cst_18 = arith.constant dense<0xFF800000> : vector<8xf32>
    %24 = vector.multi_reduction <maximumf>, %23, %cst_18 [1] : vector<8x8xf32> to vector<8xf32>
    %25 = vector.shape_cast %24 : vector<8xf32> to vector<8x1xf32>
    %26 = vector.broadcast %25 : vector<8x1xf32> to vector<8x8xf32>
    %27 = arith.subf %23, %26 : vector<8x8xf32>
    %28 = math.exp %27 : vector<8x8xf32>
    %cst_19 = arith.constant dense<0.000000e+00> : vector<8xf32>
    %29 = vector.multi_reduction <add>, %28, %cst_19 [1] : vector<8x8xf32> to vector<8xf32>
    %30 = vector.shape_cast %29 : vector<8xf32> to vector<8x1xf32>
    %31 = tpu.reciprocal %30 {approx = true} : vector<8x1xf32> -> vector<8x1xf32>
    %32 = vector.broadcast %31 : vector<8x1xf32> to vector<8x8xf32>
    %33 = arith.mulf %28, %32 : vector<8x8xf32>
    %c0_20 = arith.constant 0 : index
    %c0_21 = arith.constant 0 : index
    %34 = vector.load %arg13[%c0_20, %c0_21] : memref<8x8xf32, #tpu.memory_space<vmem>>, vector<8x8xf32>
    tpu.vector_store %arg13[%c0_20, %c0_21], %33 {strides = array<i32>} : memref<8x8xf32, #tpu.memory_space<vmem>>, vector<8x8xf32>,
    %35 = vector.shape_cast %33 : vector<8x8xf32> to vector<8x8x1xf32>
    %36 = vector.broadcast %35 : vector<8x8x1xf32> to vector<8x8x32xf32>
    %37 = arith.mulf %36, %2 : vector<8x8x32xf32>
    %cst_22 = arith.constant dense<0.000000e+00> : vector<8x32xf32>
    %38 = vector.multi_reduction <add>, %37, %cst_22 [1] : vector<8x8x32xf32> to vector<8x32xf32>
    %c0_23 = arith.constant 0 : index
    %c0_24 = arith.constant 0 : index
    %39 = vector.load %arg14[%c0_23, %c0_24] : memref<8x32xf32, #tpu.memory_space<vmem>>, vector<8x32xf32>
    tpu.vector_store %arg14[%c0_23, %c0_24], %38 {strides = array<i32>} : memref<8x32xf32, #tpu.memory_space<vmem>>, vector<8x32xf32>,
    %c0_25 = arith.constant 0 : index
    %c0_26 = arith.constant 0 : index
    %40 = vector.load %arg9[%c0_25, %c0_26] : memref<164x512xbf16, #tpu.memory_space<vmem>>, vector<164x512xbf16>
    %41 = arith.truncf %38 : vector<8x32xf32> to vector<8x32xbf16>
    %42 = vector.extract_strided_slice %40 {offsets = [0, 0], sizes = [32, 512], strides = [1, 1]} : vector<164x512xbf16> to vector<32x512xbf16>
    %cst_27 = arith.constant dense<0.000000e+00> : vector<8x512xf32>
    %43 = tpu.matmul %41, %42, %cst_27 {dimension_numbers = #tpu.dot_dimension_numbers<[1], [0], [0], [1], [0, 0, 1, 1], [], []>} : vector<8x32xbf16>, vector<32x512xbf16>, vector<8x512xf32> -> vector<8x512xf32>
    %44 = vector.extract_strided_slice %40 {offsets = [32, 0], sizes = [132, 512], strides = [1, 1]} : vector<164x512xbf16> to vector<132x512xbf16>
    %cst_28 = arith.constant dense<0.000000e+00> : vector<8x512xf32>
    %45 = tpu.matmul %3, %44, %cst_28 {dimension_numbers = #tpu.dot_dimension_numbers<[1], [0], [0], [1], [0, 0, 1, 1], [], []>} : vector<8x132xbf16>, vector<132x512xbf16>, vector<8x512xf32> -> vector<8x512xf32>
    %46 = arith.addf %43, %45 : vector<8x512xf32>
    %c0_29 = arith.constant 0 : index
    %c0_30 = arith.constant 0 : index
    %47 = vector.load %arg10[%c0_29, %c0_30] : memref<1x512xf32, #tpu.memory_space<vmem>>, vector<1x512xf32>
    %48 = vector.broadcast %47 : vector<1x512xf32> to vector<8x512xf32>
    %49 = arith.addf %46, %48 : vector<8x512xf32>
    %50 = vector.extract_strided_slice %49 {offsets = [0, 0], sizes = [8, 128], strides = [1, 1]} : vector<8x512xf32> to vector<8x128xf32>
    %51 = arith.negf %50 : vector<8x128xf32>
    %52 = math.exp %51 : vector<8x128xf32>
    %cst_31 = arith.constant 1.000000e+00 : f32
    %53 = vector.broadcast %cst_31 : f32 to vector<8x128xf32>
    %54 = arith.addf %53, %52 : vector<8x128xf32>
    %55 = arith.divf %53, %54 : vector<8x128xf32>
    %56 = vector.extract_strided_slice %49 {offsets = [0, 128], sizes = [8, 128], strides = [1, 1]} : vector<8x512xf32> to vector<8x128xf32>
    %57 = arith.negf %56 : vector<8x128xf32>
    %58 = math.exp %57 : vector<8x128xf32>
    %cst_32 = arith.constant 1.000000e+00 : f32
    %59 = vector.broadcast %cst_32 : f32 to vector<8x128xf32>
    %60 = arith.addf %59, %58 : vector<8x128xf32>
    %61 = arith.divf %59, %60 : vector<8x128xf32>
    %62 = vector.extract_strided_slice %49 {offsets = [0, 256], sizes = [8, 128], strides = [1, 1]} : vector<8x512xf32> to vector<8x128xf32>
    %63 = math.tanh %62 : vector<8x128xf32>
    %64 = vector.extract_strided_slice %49 {offsets = [0, 384], sizes = [8, 128], strides = [1, 1]} : vector<8x512xf32> to vector<8x128xf32>
    %65 = arith.negf %64 : vector<8x128xf32>
    %66 = math.exp %65 : vector<8x128xf32>
    %cst_33 = arith.constant 1.000000e+00 : f32
    %67 = vector.broadcast %cst_33 : f32 to vector<8x128xf32>
    %68 = arith.addf %67, %66 : vector<8x128xf32>
    %69 = arith.divf %67, %68 : vector<8x128xf32>
    %70 = arith.mulf %61, %1 : vector<8x128xf32>
    %71 = arith.mulf %55, %63 : vector<8x128xf32>
    %72 = arith.addf %70, %71 : vector<8x128xf32>
    %73 = math.tanh %72 : vector<8x128xf32>
    %74 = arith.mulf %69, %73 : vector<8x128xf32>
    %c0_34 = arith.constant 0 : index
    %c0_35 = arith.constant 0 : index
    %75 = vector.load %arg11[%c0_34, %c0_35] : memref<8x128xf32, #tpu.memory_space<vmem>>, vector<8x128xf32>
    tpu.vector_store %arg11[%c0_34, %c0_35], %74 {strides = array<i32>} : memref<8x128xf32, #tpu.memory_space<vmem>>, vector<8x128xf32>,
    %c0_36 = arith.constant 0 : index
    %c0_37 = arith.constant 0 : index
    %76 = vector.load %arg12[%c0_36, %c0_37] : memref<8x128xf32, #tpu.memory_space<vmem>>, vector<8x128xf32>
    tpu.vector_store %arg12[%c0_36, %c0_37], %72 {strides = array<i32>} : memref<8x128xf32, #tpu.memory_space<vmem>>, vector<8x128xf32>,
    return
  }
  func.func @transform_0(%arg0: i32) -> (i32, i32) {
    %c0_i32 = arith.constant 0 : i32
    %c0_i32_0 = arith.constant 0 : i32
    return %arg0, %c0_i32 : i32, i32
  }
  func.func @transform_1(%arg0: i32) -> (i32, i32) {
    %c0_i32 = arith.constant 0 : i32
    %c0_i32_0 = arith.constant 0 : i32
    return %arg0, %c0_i32 : i32, i32
  }
  func.func @transform_2(%arg0: i32) -> (i32, i32, i32) {
    %c0_i32 = arith.constant 0 : i32
    %c0_i32_0 = arith.constant 0 : i32
    %c0_i32_1 = arith.constant 0 : i32
    return %arg0, %c0_i32, %c0_i32_0 : i32, i32, i32
  }
  func.func @transform_3(%arg0: i32) -> (i32, i32) {
    %c0_i32 = arith.constant 0 : i32
    %c0_i32_0 = arith.constant 0 : i32
    return %arg0, %c0_i32 : i32, i32
  }
  func.func @transform_4(%arg0: i32) -> (i32, i32) {
    %c0_i32 = arith.constant 0 : i32
    %c0_i32_0 = arith.constant 0 : i32
    %c0_i32_1 = arith.constant 0 : i32
    return %c0_i32, %c0_i32_0 : i32, i32
  }
  func.func @transform_5(%arg0: i32) -> (i32, i32) {
    %c0_i32 = arith.constant 0 : i32
    %c0_i32_0 = arith.constant 0 : i32
    %c0_i32_1 = arith.constant 0 : i32
    return %c0_i32, %c0_i32_0 : i32, i32
  }
  func.func @transform_6(%arg0: i32) -> (i32, i32) {
    %c0_i32 = arith.constant 0 : i32
    %c0_i32_0 = arith.constant 0 : i32
    %c0_i32_1 = arith.constant 0 : i32
    return %c0_i32, %c0_i32_0 : i32, i32
  }
  func.func @transform_7(%arg0: i32) -> (i32, i32) {
    %c0_i32 = arith.constant 0 : i32
    %c0_i32_0 = arith.constant 0 : i32
    %c0_i32_1 = arith.constant 0 : i32
    return %c0_i32, %c0_i32_0 : i32, i32
  }
  func.func @transform_8(%arg0: i32) -> (i32, i32) {
    %c0_i32 = arith.constant 0 : i32
    %c0_i32_0 = arith.constant 0 : i32
    %c0_i32_1 = arith.constant 0 : i32
    return %c0_i32, %c0_i32_0 : i32, i32
  }
  func.func @transform_9(%arg0: i32) -> (i32, i32) {
    %c0_i32 = arith.constant 0 : i32
    %c0_i32_0 = arith.constant 0 : i32
    %c0_i32_1 = arith.constant 0 : i32
    return %c0_i32, %c0_i32_0 : i32, i32
  }
  func.func @transform_10(%arg0: i32) -> (i32, i32) {
    %c0_i32 = arith.constant 0 : i32
    %c0_i32_0 = arith.constant 0 : i32
    return %arg0, %c0_i32 : i32, i32
  }
  func.func @transform_11(%arg0: i32) -> (i32, i32) {
    %c0_i32 = arith.constant 0 : i32
    %c0_i32_0 = arith.constant 0 : i32
    return %arg0, %c0_i32 : i32, i32
  }
  func.func @transform_12(%arg0: i32) -> (i32, i32) {
    %c0_i32 = arith.constant 0 : i32
    %c0_i32_0 = arith.constant 0 : i32
    return %arg0, %c0_i32 : i32, i32
  }
  func.func @transform_13(%arg0: i32) -> (i32, i32) {
    %c0_i32 = arith.constant 0 : i32
    %c0_i32_0 = arith.constant 0 : i32
    return %arg0, %c0_i32 : i32, i32
  }
}

</mosaic_0001>

<bundles_post_ra>
// kernel: tpu_custom_call.1
= control target key start
LH: loop header
LB: loop body
LE: loop exit
PB: predicated region body
PF: predicated region fallthrough
CT: control target
= control target key end

     0   :  { %19 = vsyncpa [#allocation3], 0  ;;  %s2337_s0 = inlined_call_operand.hbm [shape: f32[8,128], index: 0, kind: input, shape index: {}]   ;;  %s2338_s1 = inlined_call_operand.hbm [shape: f32[8,128], index: 1, kind: input, shape index: {}]   ;;  %s2339_s2 = inlined_call_operand.hbm [shape: f32[8,8,32], index: 2, kind: input, shape index: {}]   ;;  %s2340_s3 = inlined_call_operand.vmem [shape: bf16[8,132], index: 3, kind: input, shape index: {}]   ;;  %s2341_s4 = inlined_call_operand.hbm [shape: bf16[32,128], index: 4, kind: input, shape index: {}]   ;;  %s2342_s5 = inlined_call_operand.hbm [shape: bf16[128,128], index: 5, kind: input, shape index: {}]   ;;  %s2343_s6 = inlined_call_operand.vmem [shape: f32[1,128], index: 6, kind: input, shape index: {}]   ;;  %s2344_s7 = inlined_call_operand.vmem [shape: f32[1,128], index: 7, kind: input, shape index: {}]   ;;  %s2345_s8 = inlined_call_operand.hbm [shape: bf16[164,512], index: 8, kind: input, shape index: {}]   ;;  %s2346_s9 = inlined_call_operand.vmem [shape: f32[1,512], index: 9, kind: input, shape index: {}]   ;;  %s2347_s10 = inlined_call_operand.hbm [shape: f32[8,128], index: 10, kind: output, shape index: {0}]   ;;  %s2348_s11 = inlined_call_operand.hbm [shape: f32[8,128], index: 11, kind: output, shape index: {1}]   ;;  %s2349_s12 = inlined_call_operand.hbm [shape: f32[8,8], index: 12, kind: output, shape index: {2}]   ;;  %s2350_s13 = inlined_call_operand.hbm [shape: f32[8,32], index: 13, kind: output, shape index: {3}]  }
   0x1   :  { %20 = vsyncpa [#allocation6], 0 }
   0x2   :  { %21 = vsyncpa [#allocation9], 0 }
   0x3   :  { %22 = vsyncpa [#allocation12], 0 }
   0x4   :  { %23 = vsyncpa [#allocation4], 0 }
   0x5   :  { %24 = vsyncpa [#allocation15], 0 }
   0x6   :  { %25 = vsyncpa [#allocation18], 0  ;;  %s1896_s25 = smov [#allocation5]   ;;  %s1897_s27 = smov [#allocation8]  }
   0x7   :  { %s42_s26 = sshll.u32 %s1896_s25, 4  ;;  %s65_s28 = sshll.u32 %s1897_s27, 4  ;;  %s43_s26 = int_to_ptr.vmem [resolvable:$true] %s42_s26  ;;  %s1987_s28 = int_to_ptr.vmem [resolvable:$true] %s65_s28 }
   0x8   :  { %s1662_s14 = scalar_lea.hbm %s2338_s1, 128 }
   0x9   :  { %p1663_p0 = scmp.ne.s32.totalorder %s2338_s1, %s1662_s14  ;;  %p1666_p1 = scmp.lt.u32.totalorder %s1662_s14, %s2338_s1 }
   0xb   :  { %p1668_p2 = pnand %p1666_p1, %p1663_p0 }
   0xd   :  { %1671 = shalt.err (!%p1668_p2)
}
   0xe   :  { %s1672_s19 = scalar_lea.vmem %s43_s26, 128  ;;  %p1677_p4 = scmp.lt.s32.totalorder %s43_s26, %s43_s26 }
   0xf   :  { %p1673_p3 = scmp.ne.s32.totalorder %s43_s26, %s1672_s19  ;;  %p1678_p5 = scmp.lt.s32.totalorder %s1672_s19, %s1672_s19 }
  0x11   :  { %p1679_p6 = por %p1678_p5, %p1677_p4 }
  0x13   :  { %p1680_p7 = pnand %p1679_p6, %p1673_p3 }
  0x15   :  { %1683 = shalt.err (!%p1680_p7)
}
  0x16   :  { %45 = dma.hbm_to_vmem [thread:$0]  %s2338_s1, 128, %s43_s26, [#allocation6]  }
  0x17   :  { %s1684_s24 = scalar_lea.hbm %s2341_s4, 256 }
  0x18   :  { %p1685_p8 = scmp.ne.s32.totalorder %s2341_s4, %s1684_s24  ;;  %p1688_p9 = scmp.lt.u32.totalorder %s1684_s24, %s2341_s4 }
  0x1a   :  { %p1690_p10 = pnand %p1688_p9, %p1685_p8 }
  0x1c   :  { %1693 = shalt.err (!%p1690_p10)
}
  0x1d   :  { %s1694_s14 = scalar_lea.vmem %s1987_s28, 256  ;;  %p1699_p12 = scmp.lt.s32.totalorder %s1987_s28, %s1987_s28 }
  0x1e   :  { %p1695_p11 = scmp.ne.s32.totalorder %s1987_s28, %s1694_s14  ;;  %p1700_p13 = scmp.lt.s32.totalorder %s1694_s14, %s1694_s14 }
  0x20   :  { %p1701_p0 = por %p1700_p13, %p1699_p12 }
  0x22   :  { %p1702_p1 = pnand %p1701_p0, %p1695_p11 }
  0x24   :  { %1705 = shalt.err (!%p1702_p1)
}
  0x25   :  { %s1898_s1 = smov 64   ;;  %s1899_s26 = smov 4  }
  0x26   :  { %71 = dma.hbm_to_vmem [thread:$0]  %s2341_s4, 256, %s1987_s28, [#allocation9], %s1898_s1, %s1898_s1, %s1899_s26  }
  0x27   :  { %s1900_s17 = smov [#allocation2]   ;;  %s1901_s19 = smov [#allocation7]  }
  0x28   :  { %s32_s18 = sshll.u32 %s1900_s17, 4  ;;  %s51_s20 = sshll.u32 %s1901_s19, 4  ;;  %s33_s18 = int_to_ptr.vmem [resolvable:$true] %s32_s18  ;;  %s2021_s20 = int_to_ptr.vmem [resolvable:$true] %s51_s20 }
  0x29   :  { %s1706_s23 = scalar_lea.hbm %s2337_s0, 128 }
  0x2a   :  { %p1707_p2 = scmp.ne.s32.totalorder %s2337_s0, %s1706_s23  ;;  %p1710_p3 = scmp.lt.u32.totalorder %s1706_s23, %s2337_s0 }
  0x2c   :  { %p1712_p4 = pnand %p1710_p3, %p1707_p2 }
  0x2e   :  { %1715 = shalt.err (!%p1712_p4)
}
  0x2f   :  { %s1716_s4 = scalar_lea.vmem %s33_s18, 128  ;;  %p1721_p6 = scmp.lt.s32.totalorder %s33_s18, %s33_s18 }
  0x30   :  { %p1717_p5 = scmp.ne.s32.totalorder %s33_s18, %s1716_s4  ;;  %p1722_p7 = scmp.lt.s32.totalorder %s1716_s4, %s1716_s4 }
  0x32   :  { %p1723_p8 = por %p1722_p7, %p1721_p6 }
  0x34   :  { %p1724_p9 = pnand %p1723_p8, %p1717_p5 }
  0x36   :  { %1727 = shalt.err (!%p1724_p9)
}
  0x37   :  { %35 = dma.hbm_to_vmem [thread:$0]  %s2337_s0, 128, %s33_s18, [#allocation3]  }
  0x38   :  { %s1728_s16 = scalar_lea.hbm %s2339_s2, 1024 }
  0x39   :  { %p1729_p10 = scmp.ne.s32.totalorder %s2339_s2, %s1728_s16  ;;  %p1732_p11 = scmp.lt.u32.totalorder %s1728_s16, %s2339_s2 }
  0x3b   :  { %p1734_p12 = pnand %p1732_p11, %p1729_p10 }
  0x3d   :  { %1737 = shalt.err (!%p1734_p12)
}
  0x3e   :  { %s1738_s23 = scalar_lea.vmem %s2021_s20, 1024  ;;  %p1743_p0 = scmp.lt.s32.totalorder %s2021_s20, %s2021_s20 }
  0x3f   :  { %p1739_p13 = scmp.ne.s32.totalorder %s2021_s20, %s1738_s23  ;;  %p1744_p1 = scmp.lt.s32.totalorder %s1738_s23, %s1738_s23 }
  0x41   :  { %p1745_p2 = por %p1744_p1, %p1743_p0 }
  0x43   :  { %p1746_p3 = pnand %p1745_p2, %p1739_p13 }
  0x45   :  { %1749 = shalt.err (!%p1746_p3)
}
  0x46   :  { %s1902_s0 = smov 128   ;;  %s1903_s18 = smov 8  }
  0x47   :  { %57 = dma.hbm_to_vmem [thread:$0]  %s2339_s2, 1024, %s2021_s20, [#allocation6], %s1902_s0, %s1902_s0, %s1903_s18  }
  0x48   :  { %s1904_s27 = smov [#allocation10]   ;;  %s1905_s4 = smov [#allocation11]  }
  0x49   :  { %s77_s29 = sshll.u32 %s1904_s27, 4  ;;  %s93_s28 = sshll.u32 %s1905_s4, 4  ;;  %s78_s29 = int_to_ptr.vmem [resolvable:$true] %s77_s29  ;;  %s2052_s28 = int_to_ptr.vmem [resolvable:$true] %s93_s28 }
  0x4a   :  { %s1750_s15 = scalar_lea.hbm %s2342_s5, 1024 }
  0x4b   :  { %p1751_p4 = scmp.ne.s32.totalorder %s2342_s5, %s1750_s15  ;;  %p1754_p5 = scmp.lt.u32.totalorder %s1750_s15, %s2342_s5 }
  0x4d   :  { %p1756_p6 = pnand %p1754_p5, %p1751_p4 }
  0x4f   :  { %1759 = shalt.err (!%p1756_p6)
}
  0x50   :  { %s1760_s2 = scalar_lea.vmem %s78_s29, 1024  ;;  %p1765_p8 = scmp.lt.s32.totalorder %s78_s29, %s78_s29 }
  0x51   :  { %p1761_p7 = scmp.ne.s32.totalorder %s78_s29, %s1760_s2  ;;  %p1766_p9 = scmp.lt.s32.totalorder %s1760_s2, %s1760_s2 }
  0x53   :  { %p1767_p10 = por %p1766_p9, %p1765_p8 }
  0x55   :  { %p1768_p11 = pnand %p1767_p10, %p1761_p7 }
  0x57   :  { %1771 = shalt.err (!%p1768_p11)
}
  0x58   :  { %83 = dma.hbm_to_vmem [thread:$0]  %s2342_s5, 1024, %s78_s29, [#allocation9], %s1898_s1, %s1898_s1, %s1899_s26  }
  0x59   :  { %s1772_s18 = scalar_lea.hbm %s2345_s8, 5376 }
  0x5a   :  { %p1773_p12 = scmp.ne.s32.totalorder %s2345_s8, %s1772_s18  ;;  %p1776_p13 = scmp.lt.u32.totalorder %s1772_s18, %s2345_s8 }
  0x5c   :  { %p1778_p0 = pnand %p1776_p13, %p1773_p12 }
  0x5e   :  { %1781 = shalt.err (!%p1778_p0)
}
  0x5f   :  { %s1782_s30 = scalar_lea.vmem %s2052_s28, 5376  ;;  %p1787_p2 = scmp.lt.s32.totalorder %s2052_s28, %s2052_s28 }
  0x60   :  { %p1783_p1 = scmp.ne.s32.totalorder %s2052_s28, %s1782_s30  ;;  %p1788_p3 = scmp.lt.s32.totalorder %s1782_s30, %s1782_s30 }
  0x62   :  { %p1789_p4 = por %p1788_p3, %p1787_p2 }
  0x64   :  { %p1790_p5 = pnand %p1789_p4, %p1783_p1 }
  0x66   :  { %1793 = shalt.err (!%p1790_p5)
}
  0x67   :  { %s1906_s5 = smov 256   ;;  %s1907_s1 = smov 16  }
  0x68   :  { %99 = dma.hbm_to_vmem [thread:$0]  %s2345_s8, 5376, %s2052_s28, [#allocation12], %s1906_s5, %s1906_s5, %s1907_s1  }
  0x69   :  { %1882 = dma.done.wait [#allocation3], 128  }
  0x6a   :  { %1883 = vsyncadd [#allocation3], 4294967168 }
  0x6b   :  { %1884 = dma.done.wait [#allocation6], 1152  }
  0x6c   :  { %1885 = vsyncadd [#allocation6], 4294966144 }
  0x6d   :  { %1886 = dma.done.wait [#allocation9], 1280  }
  0x6e   :  { %1887 = vsyncadd [#allocation9], 4294966016 }
  0x6f   :  { %1888 = dma.done.wait [#allocation12], 5376  }
  0x70   :  { %1889 = vsyncadd [#allocation12], 4294961920  ;;  %v1908_v0 = vmov 0.0   ;;  %vm1909_vm0 = vmmov 0   ;;  %v1536_v1 = vld [vmem:[#allocation10] sm:$0xff]   ;;  %v1537_v2 = vld [vmem:[#allocation10 + $0x8] sm:$0xff]   ;;  %v347_v31 = vlaneseq }
  0x71   :  { %1493 = vmatprep.subr.bf16.mxu1 %v1908_v0  ;;  %1509 = vmatprep.mubr.msk.bf16.mxu1 %vm1909_vm0, %v1908_v0  ;;  %v1538_v3 = vld [vmem:[#allocation10 + $0x10] sm:$0xff]   ;;  %v1544_v5 = vld [vmem:[#allocation8 + $0x8] sm:$0xff]   ;;  %vm152_vm1 = vcmask 261120   ;;  %v2092_v10 = vld [vmem:[#allocation7 + $0x10] sm:$0xff]  ;;  %v1910_v29 = vmov 1966171168  }
  0x72   :  { %1494 = vmatpush3.bf16.msra.mxu1 %v1536_v1  ;;  %v1542_v4 = vld [vmem:[#allocation8] sm:$0xff]   ;;  %v1539_v6 = vld [vmem:[#allocation10 + $0x18] sm:$0xff]   ;;  %v2094_v11 = vld [vmem:[#allocation7 + $0x18] sm:$0xff]  ;;  %v345_v30 = vunpack.c.l.s4 %v1910_v29  ;;  %v2115_v37 = vshrl.u32 %v347_v31, 7  ;;  %vm521_vm2 = vcmask 1041409   ;;  %vm523_vm3 = vcmask 1042434  }
  0x73   :  { %1495 = vmatprep.subr.bf16.mxu1 %v1908_v0  ;;  %1481 = vmatprep.subr.bf16.mxu0 %v1542_v4  ;;  %v2086_v7 = vld [vmem:[#allocation7] sm:$0xff]  ;;  %v2088_v8 = vld [vmem:[#allocation7 + $0x8] sm:$0xff]  ;;  %v133_v13 = vpack.c.bf16 %v2094_v11, %v2092_v10  ;;  %v1540_v15 = vld [vmem:[#allocation10 + $0x20] sm:$0xff]   ;;  %vm525_vm4 = vcmask 1043459   ;;  %vm527_vm5 = vcmask 1044484   ;;  %vm529_vm6 = vcmask 1045509  }
  0x74   :  { %1482 = vmatpush3.bf16.msra.mxu0 %v1542_v4  ;;  %v132_v9 = vpack.c.bf16 %v2088_v8, %v2086_v7  ;;  %v2096_v12 = vld [vmem:[#allocation7 + $0x20] sm:$0xff]  ;;  %v2100_v14 = vld [vmem:[#allocation7 + $0x28] sm:$0xff]  ;;  %v2105_v17 = vld [vmem:[#allocation7 + $0x30] sm:$0xff]  ;;  %v346_v36 = vunpack.c.0.s8 %v345_v30  ;;  %v2122_v47 = vsub.s32 0, %v2115_v37  ;;  %vm531_vm7 = vcmask 1046534   ;;  %s1912_s16 = smov 32  }
  0x75   :  { %1483 = vmatprep.subr.bf16.mxu0 %v1544_v5  ;;  %v134_v16 = vpack.c.bf16 %v2100_v14, %v2096_v12  ;;  %v2107_v18 = vld [vmem:[#allocation7 + $0x38] sm:$0xff]  ;;  %v1543_v20 = vld [vmem:[#allocation10 + $0x30] sm:$0xff]   ;;  %v1545_v22 = vld [vmem:[#allocation10 + $0x38] sm:$0xff]   ;;  %vm533_vm8 = vcmask 1047559   ;;  %vm536_vm9 = vcmask 64512   ;;  %vm1217_vm10 = vcmask 1041408  }
  0x76   :  { %1496 = vmatpush3.bf16.msra.mxu1 %v1537_v2  ;;  %1485 = vmatprep.mubr.msk.bf16.mxu0 %vm152_vm1, %v132_v9  ;;  %v1541_v19 = vld [vmem:[#allocation10 + $0x28] sm:$0xff]   ;;  %v135_v21 = vpack.c.bf16 %v2107_v18, %v2105_v17  ;;  %v121_v23 = vld [vmem:[#allocation2] sm:$0xff]  ;;  %v349_v39 = vsub.s32 %v346_v36, %v2115_v37  ;;  %vm1213_vm11 = vcmask 293888  }
  0x77   :  { %1497 = vmatprep.subr.bf16.mxu1 %v1908_v0  ;;  %v230_v24 = vpack.c.bf16 %v121_v23, %v121_v23  ;;  %v1403_v38 = vld [vmem:[%s2343_s6] ss:$0 sm:$0xff] }
  0x78   :  { %1484 = vmatpush3.bf16.msra.mxu0 %v1544_v5 }
  0x7a   :  { %1498 = vmatpush3.bf16.msra.mxu1 %v1538_v3 }
  0x7b   :  { %1499 = vmatprep.subr.bf16.mxu1 %v1908_v0  ;;  %1486 = vmatmul.mubr.msk.bf16.vlgmr.msra.gmra.mrb[0].mxu0 %vm152_vm1, %v133_v13 }
  0x7c   :  { %1489 = vmatprep.mubr.msk.bf16.mxu0 %vm152_vm1, %v134_v16 }
  0x7e   :  { %1500 = vmatpush3.bf16.msra.mxu1 %v1539_v6 }
  0x7f   :  { %1501 = vmatprep.subr.bf16.mxu1 %v1908_v0 }
  0x82   :  { %1502 = vmatpush3.bf16.msra.mxu1 %v1540_v15 }
  0x83   :  { %1503 = vmatprep.subr.bf16.mxu1 %v1908_v0  ;;  %1490 = vmatmul.mubr.msk.bf16.gmra.mrb[4].mxu0 %vm152_vm1, %v135_v21 }
  0x86   :  { %1504 = vmatpush3.bf16.msra.mxu1 %v1541_v19  ;;  %v1412_v19 = vld [vmem:[%s2344_s7] ss:$0 sm:$0xff] }
  0x87   :  { %1505 = vmatprep.subr.bf16.mxu1 %v1908_v0 }
  0x8a   :  { %1506 = vmatpush3.bf16.msra.mxu1 %v1543_v20 }
  0x8b   :  { %1507 = vmatprep.subr.bf16.mxu1 %v1908_v0 }
  0x8e   :  { %1508 = vmatpush3.bf16.msra.mxu1 %v1545_v22 }
  0x91   :  { %1510 = vmatmul.mubr.bf16.vlgmr.msra.gmra.mrb[0].mxu1 %v230_v24 }
 0x14e   :  { %v1487_v25 = vpop.f32.mrb[0].mxu0 }
 0x14f   :  { %v199_v26 = vpop.f32.mrb[1].mxu0 }
 0x150   :  { %v1488_v27 = vpop.f32.mrb[2].mxu0 }
 0x151   :  { %v202_v28 = vpop.f32.mrb[3].mxu0 }
 0x156   :  { %v1491_v32 = vpop.f32.mrb[4].mxu0 }
 0x157   :  { %v215_v33 = vpop.f32.mrb[5].mxu0 }
 0x158   :  { %v1492_v34 = vpop.f32.mrb[6].mxu0 }
 0x159   :  { %v218_v35 = vpop.f32.mrb[7].mxu0 }
 0x164   :  { %v336_v40 = vpop.f32.mrb[0].mxu1 }
 0x165   :  { %v337_v41 = vadd.f32 %v1403_v38, %v336_v40  ;;  %v1511_v42 = vpop.f32.mrb[1].mxu1  ;;  %v488_v38 = vand.u32 127, %v347_v31 }
 0x166   :  { %v339_v43 = vpop.f32.mrb[2].mxu1 }
 0x167   :  { %v343_v44 = vcombine.high %v337_v41, %v337_v41  ;;  %v350_v45 = vrot.slane %v337_v41, %v349_v39  ;;  %v1512_v46 = vpop.f32.mrb[3].mxu1  ;;  %v2137_v40 = vsub.s32 %v488_v38, %v2115_v37 }
 0x169   :  { %v357_v48 = vrot.slane %v343_v44, %v349_v39  ;;  %v358_v49 = vcombine.high %v350_v45, %v350_v45  ;;  %v366_v50 = vrot.slane %v350_v45, %v349_v39 }
 0x16b   :  { %v359_v51 = vcombine.high %v357_v48, %v357_v48  ;;  %v388_v52 = vcombine.high %v366_v50, %v366_v50  ;;  %v395_v53 = vrot.slane %v366_v50, %v2122_v47  ;;  %v380_v54 = vrot.slane %v358_v49, %v349_v39 }
 0x16c   :  { %v373_v55 = vrot.slane %v357_v48, %v349_v39 }
 0x16d   :  { %v403_v56 = vrot.slane %v388_v52, %v2122_v47  ;;  %v432_v57 = vadd.f32 %v395_v53, %v199_v26  ;;  %v390_v58 = vcombine.high %v380_v54, %v380_v54  ;;  %v399_v59 = vrot.slane %v380_v54, %v2122_v47 }
 0x16e   :  { %v389_v60 = vcombine.high %v373_v55, %v373_v55  ;;  %v411_v61 = vrot.slane %v373_v55, %v2122_v47  ;;  %v387_v62 = vrot.slane %v359_v51, %v349_v39 }
 0x16f   :  { %v434_v63 = vadd.f32 %v1487_v25, %v403_v56  ;;  %1612 = vtanh.f32 %v432_v57  ;;  %v407_v0 = vrot.slane %v390_v58, %v2122_v47  ;;  %v433_v1 = vadd.f32 %v399_v59, %v202_v28 }
 0x170   :  { %v419_v2 = vrot.slane %v389_v60, %v2122_v47  ;;  %v436_v3 = vadd.f32 %v411_v61, %v215_v33  ;;  %v391_v4 = vcombine.high %v387_v62, %v387_v62  ;;  %v415_v5 = vrot.slane %v387_v62, %v2122_v47 }
 0x171   :  { %1614 = vtanh.f32 %v434_v63  ;;  %v435_v6 = vadd.f32 %v1488_v27, %v407_v0  ;;  %v1911_v0 = vmov 0  }
 0x172   :  { %1616 = vtanh.f32 %v433_v1  ;;  %v438_v9 = vadd.f32 %v1491_v32, %v419_v2  ;;  %v423_v13 = vrot.slane %v391_v4, %v2122_v47  ;;  %v437_v15 = vadd.f32 %v415_v5, %v218_v35  ;;  %1535 = vset.pattern.permute.xlu0 %v1911_v0  ;;  %1534 = vset.pattern.permute.xlu1 %v1911_v0 }
 0x173   :  { %1618 = vtanh.f32 %v435_v6  ;;  %v2156_v1 = vsub.s32 1, %v2115_v37  ;;  %v2159_v2 = vsub.s32 2, %v2115_v37 }
 0x174   :  { %v439_v16 = vadd.f32 %v1492_v34, %v423_v13  ;;  %1620 = vtanh.f32 %v436_v3  ;;  %v2162_v3 = vsub.s32 3, %v2115_v37  ;;  %v559_v13 = vsub.s32 4, %v2115_v37 }
 0x175   :  { %1622 = vtanh.f32 %v437_v15 }
 0x176   :  { %1624 = vtanh.f32 %v438_v9 }
 0x177   :  { %1626 = vtanh.f32 %v439_v16 }
 0x179   :  { %v1613_v20 = vpop.eup %1612 }
 0x17a   :  { %v455_v21 = vmul.f32 %v1613_v20, %v1412_v19 }
 0x17b   :  { %v1615_v22 = vpop.eup %1614 }
 0x17c   :  { %v1617_v23 = vpop.eup %1616  ;;  %463 = vadd.xlane.f32.xlu0 %v455_v21  ;;  %v457_v24 = vmul.f32 %v1615_v22, %v1412_v19 }
 0x17d   :  { %v1619_v25 = vpop.eup %1618  ;;  %v456_v26 = vmul.f32 %v1617_v23, %v1412_v19  ;;  %v563_v23 = vsub.s32 5, %v2115_v37 }
 0x17e   :  { %467 = vadd.xlane.f32.xlu1 %v457_v24  ;;  %v1621_v27 = vpop.eup %1620  ;;  %v458_v28 = vmul.f32 %v1619_v25, %v1412_v19 }
 0x17f   :  { %v1623_v29 = vpop.eup %1622  ;;  %v459_v30 = vmul.f32 %v1621_v27, %v1412_v19  ;;  %v567_v27 = vsub.s32 6, %v2115_v37 }
 0x180   :  { %465 = vadd.xlane.f32.xlu0 %v456_v26  ;;  %v1625_v32 = vpop.eup %1624  ;;  %v460_v33 = vmul.f32 %v1623_v29, %v1412_v19 }
 0x181   :  { %v1627_v34 = vpop.eup %1626  ;;  %v461_v35 = vmul.f32 %v1625_v32, %v1412_v19  ;;  %v571_v32 = vsub.s32 7, %v2115_v37 }
 0x182   :  { %469 = vadd.xlane.f32.xlu1 %v458_v28  ;;  %v462_v36 = vmul.f32 %v1627_v34, %v1412_v19 }
 0x184   :  { %471 = vadd.xlane.f32.xlu0 %v459_v30 }
 0x186   :  { %473 = vadd.xlane.f32.xlu1 %v460_v33 }
 0x188   :  { %475 = vadd.xlane.f32.xlu0 %v461_v35 }
 0x18a   :  { %477 = vadd.xlane.f32.xlu1 %v462_v36 }
 0x209   :  { %v464_v39 = vpop.xlane.xlu0 %463 }
 0x20a   :  { %v492_v43 = vrot.slane %v464_v39, %v2137_v40 }
 0x20b   :  { %v468_v41 = vpop.xlane.xlu1 %467 }
 0x20c   :  { %v500_v45 = vrot.slane %v468_v41, %v2137_v40 }
 0x20d   :  { %v466_v42 = vpop.xlane.xlu0 %465 }
 0x20e   :  { %v496_v44 = vrot.slane %v466_v42, %v2137_v40 }
 0x20f   :  { %v470_v46 = vpop.xlane.xlu1 %469 }
 0x210   :  { %v522_v48 = vsel %vm521_vm2, %v496_v44, %v492_v43  ;;  %v504_v31 = vrot.slane %v470_v46, %v2137_v40 }
 0x211   :  { %v524_v49 = vsel %vm523_vm3, %v500_v45, %v522_v48  ;;  %v472_v50 = vpop.xlane.xlu0 %471 }
 0x212   :  { %v526_v51 = vsel %vm525_vm4, %v504_v31, %v524_v49  ;;  %v508_v52 = vrot.slane %v472_v50, %v2137_v40 }
 0x213   :  { %v474_v53 = vpop.xlane.xlu1 %473 }
 0x214   :  { %v528_v54 = vsel %vm527_vm5, %v508_v52, %v526_v51  ;;  %v512_v55 = vrot.slane %v474_v53, %v2137_v40 }
 0x215   :  { %v476_v56 = vpop.xlane.xlu0 %475 }
 0x216   :  { %v516_v57 = vrot.slane %v476_v56, %v2137_v40  ;;  %v530_v58 = vsel %vm529_vm6, %v512_v55, %v528_v54 }
 0x217   :  { %v478_v59 = vpop.xlane.xlu1 %477 }
 0x218   :  { %v520_v60 = vrot.slane %v478_v59, %v2137_v40  ;;  %v532_v61 = vsel %vm531_vm7, %v516_v57, %v530_v58 }
 0x21a   :  { %v534_v62 = vsel %vm533_vm8, %v520_v60, %v532_v61 }
 0x21b   :  { %v537_v63 = vsel %vm536_vm9, %v534_v62, -inf }
 0x21c   :  { %538 = vmax.xlane.f32.xlu0 %v537_v63 }
 0x2a9   :  { %v539_v4 = vpop.xlane.xlu0 %538 }
 0x2aa   :  { %v544_v5 = vrot.slane %v539_v4, %v2122_v47  ;;  %v548_v6 = vrot.slane %v539_v4, %v2156_v1  ;;  %v552_v9 = vrot.slane %v539_v4, %v2159_v2  ;;  %v556_v15 = vrot.slane %v539_v4, %v2162_v3 }
 0x2ab   :  { %v560_v24 = vrot.slane %v539_v4, %v559_v13  ;;  %v564_v28 = vrot.slane %v539_v4, %v563_v23  ;;  %v568_v33 = vrot.slane %v539_v4, %v567_v27 }
 0x2ac   :  { %v581_v16 = vsub.f32 %v464_v39, %v544_v5  ;;  %v582_v19 = vsub.f32 %v466_v42, %v548_v6  ;;  %v583_v20 = vsub.f32 %v468_v41, %v552_v9  ;;  %v584_v25 = vsub.f32 %v470_v46, %v556_v15 }
 0x2ad   :  { %v585_v29 = vsub.f32 %v472_v50, %v560_v24  ;;  %v586_v34 = vsub.f32 %v474_v53, %v564_v28  ;;  %v572_v39 = vrot.slane %v539_v4, %v571_v32  ;;  %v587_v41 = vsub.f32 %v476_v56, %v568_v33 }
 0x2ae   :  { %v589_v21 = vmul.f32 1.442695, %v581_v16  ;;  %v591_v22 = vmul.f32 1.442695, %v582_v19  ;;  %v593_v26 = vmul.f32 1.442695, %v583_v20 }
 0x2af   :  { %v595_v30 = vmul.f32 1.442695, %v584_v25  ;;  %v597_v35 = vmul.f32 1.442695, %v585_v29  ;;  %v599_v42 = vmul.f32 1.442695, %v586_v34  ;;  %v588_v44 = vsub.f32 %v478_v59, %v572_v39 }
 0x2b0   :  { %1628 = vpow2.f32 %v589_v21  ;;  %v601_v45 = vmul.f32 1.442695, %v587_v41  ;;  %v2208_v25 = vld [vmem:[%s2340_s3] sm:$0xff]  ;;  %s1913_s3 = smov [#allocation17]  }
 0x2b1   :  { %1630 = vpow2.f32 %v591_v22  ;;  %v603_v48 = vmul.f32 1.442695, %v588_v44  ;;  %v1414_v37 = vcombine.high %v2208_v25, %v2208_v25  ;;  %s1374_s17 = sshll.u32 %s1913_s3, 4  ;;  %s1375_s17 = int_to_ptr.vmem [resolvable:$true] %s1374_s17 }
 0x2b2   :  { %1632 = vpow2.f32 %v593_v26  ;;  %v1413_v26 = vcombine.low %v2208_v25, %v2208_v25  ;;  %v1590_v25 = vld [vmem:[#allocation11 + $0xe0] ss:$16 sps:$4 sm:$0xff]   ;;  %s1794_s19 = scalar_lea.vmem %s1375_s17, 128  ;;  %p1799_p7 = scmp.lt.s32.totalorder %s1375_s17, %s1375_s17 }
 0x2b3   :  { %1634 = vpow2.f32 %v595_v30  ;;  %p1795_p6 = scmp.ne.s32.totalorder %s1375_s17, %s1794_s19  ;;  %p1800_p8 = scmp.lt.s32.totalorder %s1794_s19, %s1794_s19 }
 0x2b4   :  { %1636 = vpow2.f32 %v597_v35 }
 0x2b5   :  { %1638 = vpow2.f32 %v599_v42  ;;  %p1801_p9 = por %p1800_p8, %p1799_p7 }
 0x2b6   :  { %1640 = vpow2.f32 %v601_v45 }
 0x2b7   :  { %1642 = vpow2.f32 %v603_v48  ;;  %v1550_v48 = vld [vmem:[#allocation11 + $0x4] ss:$16 sps:$4 sm:$0xff]   ;;  %p1802_p10 = pnand %p1801_p9, %p1795_p6 }
 0x2b8   :  { %1230 = vmatprep.subr.bf16.mxu0 %v1550_v48 }
 0x2ba   :  { %v1629_v36 = vpop.eup %1628 }
 0x2bb   :  { %v1631_v38 = vpop.eup %1630  ;;  %614 = vperm.xlu1 %1534, %v1629_v36  }
 0x2bc   :  { %617 = vperm.xlu0 %1535, %v1631_v38   ;;  %v1633_v43 = vpop.eup %1632 }
 0x2bd   :  { %v1635_v46 = vpop.eup %1634 }
 0x2be   :  { %v1637_v31 = vpop.eup %1636 }
 0x2bf   :  { %620 = vperm.xlu1 %1534, %v1633_v43   ;;  %v2180_v49 = vpop.eup %1638 }
 0x2c0   :  { %v2183_v50 = vpop.eup %1640 }
 0x2c1   :  { %v2186_v51 = vpop.eup %1642 }
 0x2c3   :  { %623 = vperm.xlu1 %1534, %v1635_v46  }
 0x2c7   :  { %626 = vperm.xlu1 %1534, %v1637_v31  }
 0x2cb   :  { %629 = vperm.xlu1 %1534, %v2180_v49  }
 0x2cf   :  { %632 = vperm.xlu1 %1534, %v2183_v50  }
 0x2d3   :  { %635 = vperm.xlu1 %1534, %v2186_v51  }
 0x33a   :  { %v615_v52 = vpop.permute.xlu1 %614 }
 0x33b   :  { %v618_v56 = vpop.permute.xlu0 %617  ;;  %v640_v59 = vrot.slane %v615_v52, %v2137_v40  ;;  %v1553_v52 = vld [vmem:[#allocation11 + $0xc] ss:$16 sps:$4 sm:$0xff]  }
 0x33c   :  { %v644_v58 = vrot.slane %v618_v56, %v2137_v40  ;;  %1271 = vmatprep.subr.bf16.mxu1 %v1553_v52  ;;  %v1557_v56 = vld [vmem:[#allocation11 + $0x28] ss:$16 sps:$4 sm:$0xff]  }
 0x33e   :  { %v621_v53 = vpop.permute.xlu1 %620  ;;  %v669_v0 = vsel %vm521_vm2, %v644_v58, %v640_v59  ;;  %v1560_v58 = vld [vmem:[#allocation11 + $0x40] ss:$16 sps:$4 sm:$0xff]   ;;  %v1563_v59 = vld [vmem:[#allocation11 + $0x48] ss:$16 sps:$4 sm:$0xff]  }
 0x33f   :  { %v648_v60 = vrot.slane %v621_v53, %v2137_v40  ;;  %v1548_v53 = vld [vmem:[#allocation11] ss:$16 sps:$4 sm:$0xff]  }
 0x340   :  { %1231 = vmatpush1.bf16.msra.mxu0 %v1548_v53 }
 0x341   :  { %v670_v5 = vsel %vm523_vm3, %v648_v60, %v669_v0 }
 0x342   :  { %v624_v54 = vpop.permute.xlu1 %623 }
 0x343   :  { %v652_v61 = vrot.slane %v624_v54, %v2137_v40 }
 0x345   :  { %v671_v9 = vsel %vm525_vm4, %v652_v61, %v670_v5  ;;  %v1575_v5 = vld [vmem:[#allocation11 + $0x88] ss:$16 sps:$4 sm:$0xff]  }
 0x346   :  { %v627_v55 = vpop.permute.xlu1 %626 }
 0x347   :  { %v656_v62 = vrot.slane %v627_v55, %v2137_v40  ;;  %v1559_v55 = vld [vmem:[#allocation11 + $0x2c] ss:$16 sps:$4 sm:$0xff]  }
 0x349   :  { %v672_v15 = vsel %vm527_vm5, %v656_v62, %v671_v9  ;;  %v1566_v62 = vld [vmem:[#allocation11 + $0x60] ss:$16 sps:$4 sm:$0xff]  }
 0x34a   :  { %v630_v57 = vpop.permute.xlu1 %629  ;;  %v1578_v9 = vld [vmem:[#allocation11 + $0xa0] ss:$16 sps:$4 sm:$0xff]  }
 0x34b   :  { %v660_v4 = vrot.slane %v630_v57, %v2137_v40 }
 0x34d   :  { %v673_v19 = vsel %vm529_vm6, %v660_v4, %v672_v15  ;;  %v1572_v4 = vld [vmem:[#allocation11 + $0x80] ss:$16 sps:$4 sm:$0xff]   ;;  %v1581_v15 = vld [vmem:[#allocation11 + $0xa8] ss:$16 sps:$4 sm:$0xff]  }
 0x34e   :  { %v633_v63 = vpop.permute.xlu1 %632 }
 0x34f   :  { %v664_v6 = vrot.slane %v633_v63, %v2137_v40  ;;  %v1569_v63 = vld [vmem:[#allocation11 + $0x68] ss:$16 sps:$4 sm:$0xff]  }
 0x351   :  { %v674_v21 = vsel %vm531_vm7, %v664_v6, %v673_v19  ;;  %v1580_v6 = vld [vmem:[#allocation11 + $0xa4] ss:$16 sps:$4 sm:$0xff]   ;;  %v1589_v19 = vld [vmem:[#allocation11 + $0xcc] ss:$16 sps:$4 sm:$0xff]  }
 0x352   :  { %v636_v16 = vpop.permute.xlu1 %635 }
 0x353   :  { %v668_v20 = vrot.slane %v636_v16, %v2137_v40  ;;  %v1586_v16 = vld [vmem:[#allocation11 + $0xc4] ss:$16 sps:$4 sm:$0xff]  }
 0x355   :  { %v675_v22 = vsel %vm533_vm8, %v668_v20, %v674_v21  ;;  %v1584_v20 = vld [vmem:[#allocation11 + $0xc0] ss:$16 sps:$4 sm:$0xff]   ;;  %v1587_v21 = vld [vmem:[#allocation11 + $0xc8] ss:$16 sps:$4 sm:$0xff]  }
 0x356   :  { %v677_v24 = vsel %vm536_vm9, %v675_v22, 0.0  ;;  %v1592_v22 = vld [vmem:[#allocation11 + $0xe4] ss:$16 sps:$4 sm:$0xff]  }
 0x357   :  { %678 = vadd.xlane.f32.xlu1 %v677_v24  ;;  %v1595_v24 = vld [vmem:[#allocation11 + $0xec] ss:$16 sps:$4 sm:$0xff]  }
 0x368   :  { %929 = vrot.lane.b32.xlu1 %v1413_v26, %s1912_s16  ;;  %v1593_v26 = vld [vmem:[#allocation11 + $0xe8] ss:$16 sps:$4 sm:$0xff]  }
 0x3e4   :  { %v679_v28 = vpop.xlane.xlu1 %678 }
 0x3e5   :  { %1644 = vrcp.f32 %v679_v28  ;;  %v1596_v28 = vld [vmem:[#allocation11 + $0x100] ss:$16 sps:$4 sm:$0xff]  }
 0x3ef   :  { %v1645_v29 = vpop.eup %1644 }
 0x3f0   :  { %v685_v30 = vrot.slane %v1645_v29, %v2122_v47  ;;  %v689_v34 = vrot.slane %v1645_v29, %v2156_v1  ;;  %v693_v39 = vrot.slane %v1645_v29, %v2159_v2  ;;  %v697_v42 = vrot.slane %v1645_v29, %v2162_v3 }
 0x3f1   :  { %v701_v45 = vrot.slane %v1645_v29, %v559_v13  ;;  %v709_v57 = vrot.slane %v1645_v29, %v567_v27  ;;  %v713_v61 = vrot.slane %v1645_v29, %v571_v32  ;;  %v1568_v27 = vld [vmem:[#allocation11 + $0x64] ss:$16 sps:$4 sm:$0xff]  }
 0x3f2   :  { %v722_v33 = vmul.f32 %v1629_v36, %v685_v30  ;;  %v723_v35 = vmul.f32 %v1631_v38, %v689_v34  ;;  %v724_v41 = vmul.f32 %v1633_v43, %v693_v39  ;;  %v725_v44 = vmul.f32 %v1635_v46, %v697_v42  ;;  %v1551_v36 = vld [vmem:[#allocation11 + $0x8] ss:$16 sps:$4 sm:$0xff]   ;;  %v1556_v43 = vld [vmem:[#allocation11 + $0x24] ss:$16 sps:$4 sm:$0xff]   ;;  %v1554_v46 = vld [vmem:[#allocation11 + $0x20] ss:$16 sps:$4 sm:$0xff]  }
 0x3f3   :  { %v726_v54 = vmul.f32 %v1637_v31, %v701_v45  ;;  %v705_v38 = vrot.slane %v1645_v29, %v563_v23  ;;  %1272 = vmatpush1.bf16.msra.mxu1 %v1551_v36  ;;  %1232 = vmatprep.subr.bf16.mxu0 %v1556_v43  ;;  %v1562_v23 = vld [vmem:[#allocation11 + $0x44] ss:$16 sps:$4 sm:$0xff]   ;;  %v1565_v31 = vld [vmem:[#allocation11 + $0x4c] ss:$16 sps:$4 sm:$0xff]   ;;  %v728_v60 = vmul.f32 %v2183_v50, %v709_v57  ;;  %v1599_v30 = vld [vmem:[#allocation11 + $0x108] ss:$16 sps:$4 sm:$0xff]  }
 0x3f4   :  { %739 = vperm.xlu0 %1535, %v722_v33   ;;  %1273 = vmatprep.subr.bf16.mxu1 %v1559_v55  ;;  %v729_v0 = vmul.f32 %v2186_v51, %v713_v61  ;;  %v1574_v32 = vld [vmem:[#allocation11 + $0x84] ss:$16 sps:$4 sm:$0xff]   ;;  %v1577_v50 = vld [vmem:[#allocation11 + $0x8c] ss:$16 sps:$4 sm:$0xff]   ;;  %v1602_v42 = vld [vmem:[#allocation11 + $0x120] ss:$16 sps:$4 sm:$0xff]  }
 0x3f5   :  { %v727_v13 = vmul.f32 %v2180_v49, %v705_v38  ;;  %1233 = vmatpush1.bf16.msra.mxu0 %v1554_v46  ;;  %v1571_v49 = vld [vmem:[#allocation11 + $0x6c] ss:$16 sps:$4 sm:$0xff]   ;;  %v1598_v29 = vld [vmem:[#allocation11 + $0x104] ss:$16 sps:$4 sm:$0xff]  }
 0x3f6   :  { %1234 = vmatprep.subr.bf16.mxu0 %v1562_v23  ;;  %v1583_v51 = vld [vmem:[#allocation11 + $0xac] ss:$16 sps:$4 sm:$0xff]   ;;  %v1604_v34 = vld [vmem:[#allocation11 + $0x124] ss:$16 sps:$4 sm:$0xff]  }
 0x3f7   :  { %1274 = vmatpush1.bf16.msra.mxu1 %v1557_v56  ;;  %v1601_v33 = vld [vmem:[#allocation11 + $0x10c] ss:$16 sps:$4 sm:$0xff]   ;;  %v979_v39 = vld [vmem:[#allocation11 + $0x140] sm:$0x33] }
 0x3f8   :  { %742 = vperm.xlu0 %1535, %v723_v35   ;;  %1275 = vmatprep.subr.bf16.mxu1 %v1565_v31  ;;  %v1607_v35 = vld [vmem:[#allocation11 + $0x12c] ss:$16 sps:$4 sm:$0xff]   ;;  %v1456_v45 = vcombine.high %v979_v39, %v979_v39  ;;  %v1455_v52 = vcombine.low %v979_v39, %v979_v39 }
 0x3f9   :  { %1235 = vmatpush1.bf16.msra.mxu0 %v1560_v58 }
 0x3fa   :  { %1236 = vmatprep.subr.bf16.mxu0 %v1568_v27  ;;  %v1219_v36 = vsel %vm1217_vm10, %v1455_v52, 0 }
 0x3fb   :  { %1276 = vmatpush1.bf16.msra.mxu1 %v1563_v59 }
 0x3fc   :  { %745 = vperm.xlu0 %1535, %v724_v41   ;;  %1277 = vmatprep.subr.bf16.mxu1 %v1571_v49  ;;  %v980_v41 = vld [vmem:[#allocation11 + $0x148] sm:$0x33] }
 0x3fd   :  { %1237 = vmatpush1.bf16.msra.mxu0 %v1566_v62  ;;  %v1458_v48 = vcombine.high %v980_v41, %v980_v41  ;;  %v1457_v53 = vcombine.low %v980_v41, %v980_v41 }
 0x3fe   :  { %1238 = vmatprep.subr.bf16.mxu0 %v1574_v32 }
 0x3ff   :  { %1278 = vmatpush1.bf16.msra.mxu1 %v1569_v63 }
 0x400   :  { %748 = vperm.xlu0 %1535, %v725_v44   ;;  %1279 = vmatprep.subr.bf16.mxu1 %v1577_v50  ;;  %v1605_v44 = vld [vmem:[#allocation11 + $0x128] ss:$16 sps:$4 sm:$0xff]  }
 0x401   :  { %1239 = vmatpush1.bf16.msra.mxu0 %v1572_v4 }
 0x402   :  { %1240 = vmatprep.subr.bf16.mxu0 %v1580_v6 }
 0x403   :  { %1280 = vmatpush1.bf16.msra.mxu1 %v1575_v5 }
 0x404   :  { %751 = vperm.xlu0 %1535, %v726_v54   ;;  %1281 = vmatprep.subr.bf16.mxu1 %v1583_v51  ;;  %v1225_v54 = vsel %vm1217_vm10, %v1457_v53, 0 }
 0x405   :  { %1241 = vmatpush1.bf16.msra.mxu0 %v1578_v9 }
 0x406   :  { %1242 = vmatprep.subr.bf16.mxu0 %v1586_v16 }
 0x407   :  { %1282 = vmatpush1.bf16.msra.mxu1 %v1581_v15 }
 0x408   :  { %754 = vperm.xlu0 %1535, %v727_v13   ;;  %1283 = vmatprep.subr.bf16.mxu1 %v1589_v19 }
 0x409   :  { %1243 = vmatpush1.bf16.msra.mxu0 %v1584_v20 }
 0x40a   :  { %1244 = vmatprep.subr.bf16.mxu0 %v1592_v22 }
 0x40b   :  { %1284 = vmatpush1.bf16.msra.mxu1 %v1587_v21 }
 0x40c   :  { %757 = vperm.xlu0 %1535, %v728_v60   ;;  %1285 = vmatprep.subr.bf16.mxu1 %v1595_v24 }
 0x40d   :  { %1245 = vmatpush1.bf16.msra.mxu0 %v1590_v25 }
 0x40e   :  { %1246 = vmatprep.subr.bf16.mxu0 %v1598_v29 }
 0x40f   :  { %1286 = vmatpush1.bf16.msra.mxu1 %v1593_v26 }
 0x410   :  { %760 = vperm.xlu0 %1535, %v729_v0   ;;  %1287 = vmatprep.subr.bf16.mxu1 %v1601_v33 }
 0x411   :  { %1247 = vmatpush1.bf16.msra.mxu0 %v1596_v28 }
 0x412   :  { %1248 = vmatprep.subr.bf16.mxu0 %v1604_v34 }
 0x413   :  { %1288 = vmatpush1.bf16.msra.mxu1 %v1599_v30 }
 0x414   :  { %931 = vrot.lane.b32.xlu0 %v1414_v37, %s1912_s16  ;;  %1289 = vmatprep.subr.bf16.mxu1 %v1607_v35 }
 0x415   :  { %1249 = vmatpush1.bf16.msra.mxu0 %v1602_v42 }
 0x416   :  { %1459 = vmatprep.subr.msk.bf16.mxu0 %vm1217_vm10, %v1456_v45 }
 0x417   :  { %1290 = vmatpush1.bf16.msra.mxu1 %v1605_v44 }
 0x418   :  { %1461 = vmatprep.subr.msk.bf16.mxu1 %vm1217_vm10, %v1458_v48 }
 0x419   :  { %1251 = vmatpush1.bf16.msra.mxu0 %v1219_v36 }
 0x41b   :  { %1292 = vmatpush1.bf16.msra.mxu1 %v1225_v54 }
 0x473   :  { %v740_v38 = vpop.permute.xlu0 %739 }
 0x474   :  { %v811_v43 = vmul.f32 %v740_v38, %v2086_v7  ;;  %v765_v15 = vrot.slane %v740_v38, %v2137_v40 }
 0x476   :  { %v819_v56 = vsel %vm152_vm1, %v811_v43, 0.0 }
 0x477   :  { %v743_v55 = vpop.permute.xlu0 %742  ;;  %v820_v31 = vrot.slane %v819_v56, 4 }
 0x478   :  { %v812_v46 = vmul.f32 %v743_v55, %v2088_v8  ;;  %v769_v4 = vrot.slane %v743_v55, %v2137_v40 }
 0x479   :  { %v821_v49 = vadd.f32 %v820_v31, %v819_v56 }
 0x47a   :  { %v826_v13 = vsel %vm152_vm1, %v812_v46, 0.0  ;;  %v794_v24 = vsel %vm521_vm2, %v769_v4, %v765_v15 }
 0x47b   :  { %v746_v57 = vpop.permute.xlu0 %745  ;;  %v827_v58 = vrot.slane %v826_v13, 4  ;;  %v822_v32 = vrot.slane %v821_v49, 2 }
 0x47c   :  { %v813_v23 = vmul.f32 %v746_v57, %v2092_v10  ;;  %v773_v51 = vrot.slane %v746_v57, %v2137_v40 }
 0x47d   :  { %v828_v7 = vadd.f32 %v827_v58, %v826_v13 }
 0x47e   :  { %v833_v59 = vsel %vm152_vm1, %v813_v23, 0.0  ;;  %v795_v29 = vsel %vm523_vm3, %v773_v51, %v794_v24 }
 0x47f   :  { %v834_v60 = vrot.slane %v833_v59, 4  ;;  %v749_v61 = vpop.permute.xlu0 %748  ;;  %v829_v50 = vrot.slane %v828_v7, 2 }
 0x480   :  { %v814_v27 = vmul.f32 %v749_v61, %v2094_v11  ;;  %v777_v16 = vrot.slane %v749_v61, %v2137_v40 }
 0x481   :  { %v835_v62 = vadd.f32 %v834_v60, %v833_v59  ;;  %v830_v21 = vadd.f32 %v829_v50, %v828_v7  ;;  %v930_v60 = vpop.permute.xlu1 %929 }
 0x482   :  { %v840_v8 = vsel %vm152_vm1, %v814_v27, 0.0  ;;  %v796_v35 = vsel %vm525_vm4, %v777_v16, %v795_v29 }
 0x483   :  { %v841_v63 = vrot.slane %v840_v8, 4  ;;  %v752_v0 = vpop.permute.xlu0 %751  ;;  %v836_v5 = vrot.slane %v835_v62, 2  ;;  %v831_v44 = vrot.slane %v830_v21, 1 }
 0x484   :  { %v815_v37 = vmul.f32 %v752_v0, %v2096_v12  ;;  %v823_v12 = vadd.f32 %v822_v32, %v821_v49  ;;  %v781_v22 = vrot.slane %v752_v0, %v2137_v40 }
 0x485   :  { %v842_v10 = vadd.f32 %v841_v63, %v840_v8  ;;  %v837_v25 = vadd.f32 %v836_v5, %v835_v62  ;;  %v832_v31 = vadd.f32 %v831_v44, %v830_v21 }
 0x486   :  { %v847_v6 = vsel %vm152_vm1, %v815_v37, 0.0  ;;  %v824_v42 = vrot.slane %v823_v12, 1  ;;  %v797_v45 = vsel %vm527_vm5, %v781_v22, %v796_v35 }
 0x487   :  { %v843_v11 = vrot.slane %v842_v10, 2  ;;  %v755_v9 = vpop.permute.xlu0 %754  ;;  %v848_v19 = vrot.slane %v847_v6, 4  ;;  %v838_v52 = vrot.slane %v837_v25, 1  ;;  %v893_v32 = vpack.c.bf16 %v832_v31, %v832_v31 }
 0x488   :  { %v816_v20 = vmul.f32 %v755_v9, %v2100_v14  ;;  %v785_v33 = vrot.slane %v755_v9, %v2137_v40  ;;  %v825_v23 = vadd.f32 %v824_v42, %v823_v12 }
 0x489   :  { %v849_v26 = vadd.f32 %v848_v19, %v847_v6  ;;  %v844_v30 = vadd.f32 %v843_v11, %v842_v10  ;;  %v839_v61 = vadd.f32 %v838_v52, %v837_v25  ;;  %v909_v19 = vunpack.c.l.b16 %v893_v32 }
 0x48a   :  { %v854_v28 = vsel %vm152_vm1, %v816_v20, 0.0  ;;  %v798_v43 = vsel %vm529_vm6, %v785_v33, %v797_v45  ;;  %v892_v4 = vpack.c.bf16 %v825_v23, %v825_v23  ;;  %v883_v15 = vsel %vm521_vm2, %v832_v31, %v825_v23 }
 0x48b   :  { %v758_v34 = vpop.permute.xlu0 %757  ;;  %v850_v39 = vrot.slane %v849_v26, 2  ;;  %v855_v14 = vrot.slane %v854_v28, 4  ;;  %v845_v38 = vrot.slane %v844_v30, 1  ;;  %v894_v5 = vpack.c.bf16 %v839_v61, %v839_v61 }
 0x48c   :  { %v817_v41 = vmul.f32 %v758_v34, %v2105_v17  ;;  %v789_v48 = vrot.slane %v758_v34, %v2137_v40  ;;  %v908_v22 = vunpack.c.l.b16 %v892_v4  ;;  %v884_v24 = vsel %vm523_vm3, %v839_v61, %v883_v15 }
 0x48d   :  { %v851_v53 = vadd.f32 %v850_v39, %v849_v26  ;;  %v856_v36 = vadd.f32 %v855_v14, %v854_v28  ;;  %v846_v62 = vadd.f32 %v845_v38, %v844_v30  ;;  %v910_v25 = vunpack.c.l.b16 %v894_v5 }
 0x48e   :  { %v861_v54 = vsel %vm152_vm1, %v817_v41, 0.0  ;;  %v799_v58 = vsel %vm531_vm7, %v789_v48, %v798_v43  ;;  %v916_v35 = vsel %vm521_vm2, %v909_v19, %v908_v22 }
 0x48f   :  { %v862_v55 = vrot.slane %v861_v54, 4  ;;  %v761_v46 = vpop.permute.xlu0 %760  ;;  %v852_v56 = vrot.slane %v851_v53, 1  ;;  %v857_v13 = vrot.slane %v856_v36, 2  ;;  %v895_v51 = vpack.c.bf16 %v846_v62, %v846_v62 }
 0x490   :  { %v793_v17 = vrot.slane %v761_v46, %v2137_v40  ;;  %v818_v57 = vmul.f32 %v761_v46, %v2107_v18  ;;  %v885_v30 = vsel %vm525_vm4, %v846_v62, %v884_v24  ;;  %v917_v42 = vsel %vm523_vm3, %v910_v25, %v916_v35 }
 0x491   :  { %v863_v59 = vadd.f32 %v862_v55, %v861_v54  ;;  %v858_v27 = vadd.f32 %v857_v13, %v856_v36  ;;  %v853_v40 = vadd.f32 %v852_v56, %v851_v53  ;;  %v911_v26 = vunpack.c.l.b16 %v895_v51 }
 0x492   :  { %v868_v49 = vsel %vm152_vm1, %v818_v57, 0.0  ;;  %v800_v7 = vsel %vm533_vm8, %v793_v17, %v799_v58 }
 0x493   :  { %v864_v8 = vrot.slane %v863_v59, 2  ;;  %v869_v63 = vrot.slane %v868_v49, 4  ;;  %v932_v0 = vpop.permute.xlu0 %931  ;;  %802 = vst.msk [vmem:[#allocation16] sm:$0xff] %vm536_vm9, %v800_v7  ;;  %v859_v18 = vrot.slane %v858_v27, 1  ;;  %v896_v16 = vpack.c.bf16 %v853_v40, %v853_v40 }
 0x494   :  { %v934_v37 = vsel %vm152_vm1, %v930_v60, %v932_v0  ;;  %v886_v34 = vsel %vm527_vm5, %v853_v40, %v885_v30  ;;  %v918_v52 = vsel %vm525_vm4, %v911_v26, %v917_v42 }
 0x495   :  { %v865_v50 = vadd.f32 %v864_v8, %v863_v59  ;;  %v870_v10 = vadd.f32 %v869_v63, %v868_v49  ;;  %1460 = vmatprep.mubr.msk.bf16.mxu0 %vm1213_vm11, %v934_v37  ;;  %1462 = vmatprep.mubr.msk.bf16.mxu1 %vm1213_vm11, %v934_v37  ;;  %v860_v6 = vadd.f32 %v859_v18, %v858_v27  ;;  %v912_v33 = vunpack.c.l.b16 %v896_v16 }
 0x497   :  { %v866_v11 = vrot.slane %v865_v50, 1  ;;  %v871_v9 = vrot.slane %v870_v10, 2  ;;  %v897_v20 = vpack.c.bf16 %v860_v6, %v860_v6  ;;  %v887_v41 = vsel %vm529_vm6, %v860_v6, %v886_v34 }
 0x498   :  { %v919_v36 = vsel %vm527_vm5, %v912_v33, %v918_v52 }
 0x499   :  { %v867_v12 = vadd.f32 %v866_v11, %v865_v50  ;;  %v872_v21 = vadd.f32 %v871_v9, %v870_v10  ;;  %v913_v39 = vunpack.c.l.b16 %v897_v20 }
 0x49b   :  { %v898_v28 = vpack.c.bf16 %v867_v12, %v867_v12  ;;  %v873_v29 = vrot.slane %v872_v21, 1  ;;  %v888_v45 = vsel %vm531_vm7, %v867_v12, %v887_v41  ;;  %v920_v38 = vsel %vm529_vm6, %v913_v39, %v919_v36 }
 0x49d   :  { %v874_v14 = vadd.f32 %v873_v29, %v872_v21  ;;  %v914_v44 = vunpack.c.l.b16 %v898_v28 }
 0x49f   :  { %v899_v48 = vpack.c.bf16 %v874_v14, %v874_v14  ;;  %v889_v53 = vsel %vm533_vm8, %v874_v14, %v888_v45  ;;  %v921_v43 = vsel %vm531_vm7, %v914_v44, %v920_v38 }
 0x4a0   :  { %891 = vst.msk [vmem:[#allocation17] sm:$0xff] %vm152_vm1, %v889_v53 }
 0x4a1   :  { %v915_v54 = vunpack.c.l.b16 %v899_v48 }
 0x4a3   :  { %v922_v55 = vsel %vm533_vm8, %v915_v54, %v921_v43 }
 0x4a4   :  { %v923_v46 = vpack.c.b16 %v922_v55, %v922_v55 }
 0x4a6   :  { %v937_v56 = vsel %vm152_vm1, %v923_v46, %v930_v60 }
 0x4a7   :  { %1263 = vmatmul.mubr.bf16.vlgmr.msra.gmra.mrb[8].mxu0 %v937_v56  ;;  %1304 = vmatmul.mubr.bf16.vlgmr.msra.gmra.mrb[4].mxu1 %v937_v56 }
 0x4a8   :  { %1805 = shalt.err (!%p1802_p10)
}
 0x4a9   :  { %s1806_s20 = scalar_lea.hbm %s2350_s13, 128 }
 0x4aa   :  { %p1807_p11 = scmp.ne.s32.totalorder %s2350_s13, %s1806_s20  ;;  %p1810_p12 = scmp.lt.u32.totalorder %s1806_s20, %s2350_s13 }
 0x4ac   :  { %p1812_p13 = pnand %p1810_p12, %p1807_p11 }
 0x4ae   :  { %1815 = shalt.err (!%p1812_p13)
}
 0x4af   :  { %1377 = dma.vmem_to_hbm [thread:$0]  %s1375_s17, 128, %s2350_s13, [#allocation18]   ;;  %v981_v13 = vld [vmem:[%s2346_s9] sm:$0xf]  ;;  %v122_v6 = vld [vmem:[#allocation5] sm:$0xff] }
 0x4b0   :  { %v986_v17 = vrot.slane %v981_v13, %v2122_v47  ;;  %v990_v57 = vrot.slane %v981_v13, %v2156_v1  ;;  %v998_v0 = vrot.slane %v981_v13, %v2162_v3  ;;  %v994_v47 = vrot.slane %v981_v13, %v2159_v2  ;;  %s1914_s9 = smov [#allocation14]   ;;  %s1915_s30 = smov [#allocation16]  }
 0x4b1   :  { %s1354_s13 = sshll.u32 %s1914_s9, 4  ;;  %s1364_s5 = sshll.u32 %s1915_s30, 4  ;;  %s1355_s13 = int_to_ptr.vmem [resolvable:$true] %s1354_s13  ;;  %s1365_s5 = int_to_ptr.vmem [resolvable:$true] %s1364_s5 }
 0x4b2   :  { %s1816_s1 = scalar_lea.vmem %s1355_s13, 128  ;;  %p1821_p1 = scmp.lt.s32.totalorder %s1355_s13, %s1355_s13 }
 0x4b3   :  { %p1817_p0 = scmp.ne.s32.totalorder %s1355_s13, %s1816_s1  ;;  %p1822_p2 = scmp.lt.s32.totalorder %s1816_s1, %s1816_s1 }
 0x4b5   :  { %p1823_p3 = por %p1822_p2, %p1821_p1 }
 0x4b7   :  { %p1824_p4 = pnand %p1823_p3, %p1817_p0 }
 0x57a   :  { %v1264_v23 = vpop.f32.mrb[8].mxu0  ;;  %v1305_v31 = vpop.f32.mrb[4].mxu1 }
 0x57b   :  { %v1265_v58 = vadd.f32 %v1264_v23, %v986_v17  ;;  %v1266_v59 = vpop.f32.mrb[9].mxu0  ;;  %v1307_v60 = vpop.f32.mrb[5].mxu1  ;;  %v1306_v18 = vadd.f32 %v1305_v31, %v994_v47 }
 0x57c   :  { %v1267_v61 = vadd.f32 %v1266_v59, %v990_v57  ;;  %v1268_v27 = vpop.f32.mrb[10].mxu0  ;;  %v1309_v49 = vpop.f32.mrb[6].mxu1  ;;  %v1308_v40 = vadd.f32 %v1307_v60, %v998_v0 }
 0x57d   :  { %v1463_v7 = vmul.f32 -1.442695, %v1265_v58  ;;  %v1269_v62 = vpop.f32.mrb[11].mxu0  ;;  %v1310_v8 = vpop.f32.mrb[7].mxu1 }
 0x57e   :  { %v1464_v63 = vmul.f32 -1.442695, %v1267_v61  ;;  %v1465_v1 = vmul.f32 -1.442695, %v1308_v40 }
 0x57f   :  { %1646 = vpow2.f32 %v1463_v7 }
 0x580   :  { %1648 = vpow2.f32 %v1464_v63 }
 0x581   :  { %1650 = vpow2.f32 %v1465_v1 }
 0x582   :  { %1652 = vtanh.f32 %v1306_v18 }
 0x589   :  { %v1647_v37 = vpop.eup %1646 }
 0x58a   :  { %v1649_v32 = vpop.eup %1648  ;;  %v1315_v50 = vadd.f32 1.0, %v1647_v37 }
 0x58b   :  { %v1321_v10 = vadd.f32 1.0, %v1649_v32  ;;  %v1651_v4 = vpop.eup %1650 }
 0x58c   :  { %1654 = vrcp.f32 %v1315_v50  ;;  %v1653_v5 = vpop.eup %1652  ;;  %v1328_v11 = vadd.f32 1.0, %v1651_v4 }
 0x58d   :  { %1656 = vrcp.f32 %v1321_v10 }
 0x58e   :  { %1658 = vrcp.f32 %v1328_v11 }
 0x596   :  { %v1655_v51 = vpop.eup %1654 }
 0x597   :  { %v1657_v3 = vpop.eup %1656  ;;  %v1332_v9 = vmul.f32 %v1655_v51, %v1653_v5 }
 0x598   :  { %v1331_v2 = vmul.f32 %v1657_v3, %v122_v6 }
 0x59a   :  { %v1333_v15 = vadd.f32 %v1332_v9, %v1331_v2 }
 0x59c   :  { %1660 = vtanh.f32 %v1333_v15  ;;  %1337 = vst [vmem:[#allocation14] sm:$0xff] %v1333_v15 }
 0x59d   :  { %1827 = shalt.err (!%p1824_p4)
}
 0x59e   :  { %s1828_s8 = scalar_lea.hbm %s2348_s11, 128 }
 0x59f   :  { %p1829_p5 = scmp.ne.s32.totalorder %s2348_s11, %s1828_s8  ;;  %p1832_p6 = scmp.lt.u32.totalorder %s1828_s8, %s2348_s11 }
 0x5a1   :  { %p1834_p7 = pnand %p1832_p6, %p1829_p5 }
 0x5a3   :  { %1837 = shalt.err (!%p1834_p7)
}
 0x5a4   :  { %1357 = dma.vmem_to_hbm [thread:$0]  %s1355_s13, 128, %s2348_s11, [#allocation15]  }
 0x5a5   :  { %s1838_s3 = scalar_lea.vmem %s1365_s5, 128  ;;  %p1843_p9 = scmp.lt.s32.totalorder %s1365_s5, %s1365_s5 }
 0x5a6   :  { %p1839_p8 = scmp.ne.s32.totalorder %s1365_s5, %s1838_s3  ;;  %p1844_p10 = scmp.lt.s32.totalorder %s1838_s3, %s1838_s3 }
 0x5a8   :  { %p1845_p11 = por %p1844_p10, %p1843_p9 }
 0x5aa   :  { %p1846_p12 = pnand %p1845_p11, %p1839_p8 }
 0x5ac   :  { %1849 = shalt.err (!%p1846_p12)
}
 0x5ad   :  { %s1850_s21 = scalar_lea.hbm %s2349_s12, 128 }
 0x5ae   :  { %p1851_p13 = scmp.ne.s32.totalorder %s2349_s12, %s1850_s21  ;;  %p1854_p0 = scmp.lt.u32.totalorder %s1850_s21, %s2349_s12 }
 0x5b0   :  { %p1856_p1 = pnand %p1854_p0, %p1851_p13 }
 0x5b2   :  { %1859 = shalt.err (!%p1856_p1)
}
 0x5b3   :  { %1367 = dma.vmem_to_hbm [thread:$0]  %s1365_s5, 128, %s2349_s12, [#allocation15]   ;;  %v1659_v16 = vpop.eup %1658 }
 0x5b4   :  { %s1916_s18 = smov [#allocation13]   ;;  %v1661_v19 = vpop.eup %1660 }
 0x5b5   :  { %s1344_s24 = sshll.u32 %s1916_s18, 4  ;;  %v1335_v20 = vmul.f32 %v1661_v19, %v1659_v16  ;;  %s1345_s24 = int_to_ptr.vmem [resolvable:$true] %s1344_s24 }
 0x5b6   :  { %s1860_s25 = scalar_lea.vmem %s1345_s24, 128  ;;  %p1865_p3 = scmp.lt.s32.totalorder %s1345_s24, %s1345_s24 }
 0x5b7   :  { %1336 = vst [vmem:[#allocation13] sm:$0xff] %v1335_v20  ;;  %p1861_p2 = scmp.ne.s32.totalorder %s1345_s24, %s1860_s25  ;;  %p1866_p4 = scmp.lt.s32.totalorder %s1860_s25, %s1860_s25 }
 0x5b9   :  { %p1867_p5 = por %p1866_p4, %p1865_p3 }
 0x5bb   :  { %p1868_p6 = pnand %p1867_p5, %p1861_p2 }
 0x5bd   :  { %1871 = shalt.err (!%p1868_p6)
}
 0x5be   :  { %s1872_s9 = scalar_lea.hbm %s2347_s10, 128 }
 0x5bf   :  { %p1873_p7 = scmp.ne.s32.totalorder %s2347_s10, %s1872_s9  ;;  %p1876_p8 = scmp.lt.u32.totalorder %s1872_s9, %s2347_s10 }
 0x5c1   :  { %p1878_p9 = pnand %p1876_p8, %p1873_p7 }
 0x5c3   :  { %1881 = shalt.err (!%p1878_p9)
}
 0x5c4   :  { %1347 = dma.vmem_to_hbm [thread:$0]  %s1345_s24, 128, %s2347_s10, [#allocation4]  }
 0x5c5   :  { %1890 = dma.done.wait [#allocation4], 128  }
 0x5c6   :  { %1891 = vsyncadd [#allocation4], 4294967168 }
 0x5c7   :  { %1892 = dma.done.wait [#allocation15], 256  }
 0x5c8   :  { %1893 = vsyncadd [#allocation15], 4294967040 }
 0x5c9   :  { %1894 = dma.done.wait [#allocation18], 128  }
 0x5ca   :  { %1895 = vsyncadd [#allocation18], 4294967168 }
 0x5cb   :  { %1390 = vsyncpa [#allocation3], 1 }
 0x5cc   :  { %1391 = vsyncpa [#allocation6], 1 }
 0x5cd   :  { %1392 = vsyncpa [#allocation9], 1 }
 0x5ce   :  { %1393 = vsyncpa [#allocation12], 1 }
 0x5cf   :  { %1394 = vsyncpa [#allocation4], 1 }
 0x5d0   :  { %1395 = vsyncpa [#allocation15], 1 }
 0x5d1   :  { %1396 = vsyncpa [#allocation18], 1 }

// kernel: tpu_custom_call.1
= control target key start
LH: loop header
LB: loop body
LE: loop exit
PB: predicated region body
PF: predicated region fallthrough
CT: control target
= control target key end

     0   :  { %19 = vsyncpa [#allocation3], 0  ;;  %s2413_s0 = inlined_call_operand.hbm [shape: f32[8,128], index: 0, kind: input, shape index: {}]   ;;  %s2414_s1 = inlined_call_operand.hbm [shape: f32[8,128], index: 1, kind: input, shape index: {}]   ;;  %s2415_s2 = inlined_call_operand.hbm [shape: f32[8,8,32], index: 2, kind: input, shape index: {}]   ;;  %s2416_s3 = inlined_call_operand.vmem [shape: bf16[8,132], index: 3, kind: input, shape index: {}]   ;;  %s2417_s4 = inlined_call_operand.hbm [shape: bf16[32,128], index: 4, kind: input, shape index: {}]   ;;  %s2418_s5 = inlined_call_operand.hbm [shape: bf16[128,128], index: 5, kind: input, shape index: {}]   ;;  %s2419_s6 = inlined_call_operand.vmem [shape: f32[1,128], index: 6, kind: input, shape index: {}]   ;;  %s2420_s7 = inlined_call_operand.vmem [shape: f32[1,128], index: 7, kind: input, shape index: {}]   ;;  %s2421_s8 = inlined_call_operand.hbm [shape: bf16[164,512], index: 8, kind: input, shape index: {}]   ;;  %s2422_s9 = inlined_call_operand.vmem [shape: f32[1,512], index: 9, kind: input, shape index: {}]   ;;  %s2423_s10 = inlined_call_operand.hbm [shape: f32[8,128], index: 10, kind: output, shape index: {0}]   ;;  %s2424_s11 = inlined_call_operand.hbm [shape: f32[8,128], index: 11, kind: output, shape index: {1}]   ;;  %s2425_s12 = inlined_call_operand.hbm [shape: f32[8,8], index: 12, kind: output, shape index: {2}]   ;;  %s2426_s13 = inlined_call_operand.hbm [shape: f32[8,32], index: 13, kind: output, shape index: {3}]  }
   0x1   :  { %20 = vsyncpa [#allocation6], 0 }
   0x2   :  { %21 = vsyncpa [#allocation9], 0 }
   0x3   :  { %22 = vsyncpa [#allocation12], 0 }
   0x4   :  { %23 = vsyncpa [#allocation4], 0 }
   0x5   :  { %24 = vsyncpa [#allocation15], 0 }
   0x6   :  { %25 = vsyncpa [#allocation18], 0  ;;  %s1977_s25 = smov [#allocation5]   ;;  %s1978_s27 = smov [#allocation8]  }
   0x7   :  { %s42_s26 = sshll.u32 %s1977_s25, 4  ;;  %s65_s28 = sshll.u32 %s1978_s27, 4  ;;  %s43_s26 = int_to_ptr.vmem [resolvable:$true] %s42_s26  ;;  %s2067_s28 = int_to_ptr.vmem [resolvable:$true] %s65_s28 }
   0x8   :  { %s1743_s14 = scalar_lea.hbm %s2414_s1, 128 }
   0x9   :  { %p1744_p0 = scmp.ne.s32.totalorder %s2414_s1, %s1743_s14  ;;  %p1747_p1 = scmp.lt.u32.totalorder %s1743_s14, %s2414_s1 }
   0xb   :  { %p1749_p2 = pnand %p1747_p1, %p1744_p0 }
   0xd   :  { %1752 = shalt.err (!%p1749_p2)
}
   0xe   :  { %s1753_s19 = scalar_lea.vmem %s43_s26, 128  ;;  %p1758_p4 = scmp.lt.s32.totalorder %s43_s26, %s43_s26 }
   0xf   :  { %p1754_p3 = scmp.ne.s32.totalorder %s43_s26, %s1753_s19  ;;  %p1759_p5 = scmp.lt.s32.totalorder %s1753_s19, %s1753_s19 }
  0x11   :  { %p1760_p6 = por %p1759_p5, %p1758_p4 }
  0x13   :  { %p1761_p7 = pnand %p1760_p6, %p1754_p3 }
  0x15   :  { %1764 = shalt.err (!%p1761_p7)
}
  0x16   :  { %45 = dma.hbm_to_vmem [thread:$0]  %s2414_s1, 128, %s43_s26, [#allocation6]  }
  0x17   :  { %s1765_s24 = scalar_lea.hbm %s2417_s4, 256 }
  0x18   :  { %p1766_p8 = scmp.ne.s32.totalorder %s2417_s4, %s1765_s24  ;;  %p1769_p9 = scmp.lt.u32.totalorder %s1765_s24, %s2417_s4 }
  0x1a   :  { %p1771_p10 = pnand %p1769_p9, %p1766_p8 }
  0x1c   :  { %1774 = shalt.err (!%p1771_p10)
}
  0x1d   :  { %s1775_s14 = scalar_lea.vmem %s2067_s28, 256  ;;  %p1780_p12 = scmp.lt.s32.totalorder %s2067_s28, %s2067_s28 }
  0x1e   :  { %p1776_p11 = scmp.ne.s32.totalorder %s2067_s28, %s1775_s14  ;;  %p1781_p13 = scmp.lt.s32.totalorder %s1775_s14, %s1775_s14 }
  0x20   :  { %p1782_p0 = por %p1781_p13, %p1780_p12 }
  0x22   :  { %p1783_p1 = pnand %p1782_p0, %p1776_p11 }
  0x24   :  { %1786 = shalt.err (!%p1783_p1)
}
  0x25   :  { %s1979_s1 = smov 64   ;;  %s1980_s26 = smov 4  }
  0x26   :  { %71 = dma.hbm_to_vmem [thread:$0]  %s2417_s4, 256, %s2067_s28, [#allocation9], %s1979_s1, %s1979_s1, %s1980_s26  }
  0x27   :  { %s1981_s17 = smov [#allocation2]   ;;  %s1982_s19 = smov [#allocation7]  }
  0x28   :  { %s32_s18 = sshll.u32 %s1981_s17, 4  ;;  %s51_s20 = sshll.u32 %s1982_s19, 4  ;;  %s33_s18 = int_to_ptr.vmem [resolvable:$true] %s32_s18  ;;  %s2101_s20 = int_to_ptr.vmem [resolvable:$true] %s51_s20 }
  0x29   :  { %s1787_s23 = scalar_lea.hbm %s2413_s0, 128 }
  0x2a   :  { %p1788_p2 = scmp.ne.s32.totalorder %s2413_s0, %s1787_s23  ;;  %p1791_p3 = scmp.lt.u32.totalorder %s1787_s23, %s2413_s0 }
  0x2c   :  { %p1793_p4 = pnand %p1791_p3, %p1788_p2 }
  0x2e   :  { %1796 = shalt.err (!%p1793_p4)
}
  0x2f   :  { %s1797_s4 = scalar_lea.vmem %s33_s18, 128  ;;  %p1802_p6 = scmp.lt.s32.totalorder %s33_s18, %s33_s18 }
  0x30   :  { %p1798_p5 = scmp.ne.s32.totalorder %s33_s18, %s1797_s4  ;;  %p1803_p7 = scmp.lt.s32.totalorder %s1797_s4, %s1797_s4 }
  0x32   :  { %p1804_p8 = por %p1803_p7, %p1802_p6 }
  0x34   :  { %p1805_p9 = pnand %p1804_p8, %p1798_p5 }
  0x36   :  { %1808 = shalt.err (!%p1805_p9)
}
  0x37   :  { %35 = dma.hbm_to_vmem [thread:$0]  %s2413_s0, 128, %s33_s18, [#allocation3]  }
  0x38   :  { %s1809_s16 = scalar_lea.hbm %s2415_s2, 1024 }
  0x39   :  { %p1810_p10 = scmp.ne.s32.totalorder %s2415_s2, %s1809_s16  ;;  %p1813_p11 = scmp.lt.u32.totalorder %s1809_s16, %s2415_s2 }
  0x3b   :  { %p1815_p12 = pnand %p1813_p11, %p1810_p10 }
  0x3d   :  { %1818 = shalt.err (!%p1815_p12)
}
  0x3e   :  { %s1819_s23 = scalar_lea.vmem %s2101_s20, 1024  ;;  %p1824_p0 = scmp.lt.s32.totalorder %s2101_s20, %s2101_s20 }
  0x3f   :  { %p1820_p13 = scmp.ne.s32.totalorder %s2101_s20, %s1819_s23  ;;  %p1825_p1 = scmp.lt.s32.totalorder %s1819_s23, %s1819_s23 }
  0x41   :  { %p1826_p2 = por %p1825_p1, %p1824_p0 }
  0x43   :  { %p1827_p3 = pnand %p1826_p2, %p1820_p13 }
  0x45   :  { %1830 = shalt.err (!%p1827_p3)
}
  0x46   :  { %s1983_s0 = smov 128   ;;  %s1984_s18 = smov 8  }
  0x47   :  { %57 = dma.hbm_to_vmem [thread:$0]  %s2415_s2, 1024, %s2101_s20, [#allocation6], %s1983_s0, %s1983_s0, %s1984_s18  }
  0x48   :  { %s1985_s27 = smov [#allocation10]   ;;  %s1986_s4 = smov [#allocation11]  }
  0x49   :  { %s77_s29 = sshll.u32 %s1985_s27, 4  ;;  %s93_s28 = sshll.u32 %s1986_s4, 4  ;;  %s78_s29 = int_to_ptr.vmem [resolvable:$true] %s77_s29  ;;  %s2132_s28 = int_to_ptr.vmem [resolvable:$true] %s93_s28 }
  0x4a   :  { %s1831_s15 = scalar_lea.hbm %s2418_s5, 1024 }
  0x4b   :  { %p1832_p4 = scmp.ne.s32.totalorder %s2418_s5, %s1831_s15  ;;  %p1835_p5 = scmp.lt.u32.totalorder %s1831_s15, %s2418_s5 }
  0x4d   :  { %p1837_p6 = pnand %p1835_p5, %p1832_p4 }
  0x4f   :  { %1840 = shalt.err (!%p1837_p6)
}
  0x50   :  { %s1841_s2 = scalar_lea.vmem %s78_s29, 1024  ;;  %p1846_p8 = scmp.lt.s32.totalorder %s78_s29, %s78_s29 }
  0x51   :  { %p1842_p7 = scmp.ne.s32.totalorder %s78_s29, %s1841_s2  ;;  %p1847_p9 = scmp.lt.s32.totalorder %s1841_s2, %s1841_s2 }
  0x53   :  { %p1848_p10 = por %p1847_p9, %p1846_p8 }
  0x55   :  { %p1849_p11 = pnand %p1848_p10, %p1842_p7 }
  0x57   :  { %1852 = shalt.err (!%p1849_p11)
}
  0x58   :  { %83 = dma.hbm_to_vmem [thread:$0]  %s2418_s5, 1024, %s78_s29, [#allocation9], %s1979_s1, %s1979_s1, %s1980_s26  }
  0x59   :  { %s1853_s18 = scalar_lea.hbm %s2421_s8, 5376 }
  0x5a   :  { %p1854_p12 = scmp.ne.s32.totalorder %s2421_s8, %s1853_s18  ;;  %p1857_p13 = scmp.lt.u32.totalorder %s1853_s18, %s2421_s8 }
  0x5c   :  { %p1859_p0 = pnand %p1857_p13, %p1854_p12 }
  0x5e   :  { %1862 = shalt.err (!%p1859_p0)
}
  0x5f   :  { %s1863_s30 = scalar_lea.vmem %s2132_s28, 5376  ;;  %p1868_p2 = scmp.lt.s32.totalorder %s2132_s28, %s2132_s28 }
  0x60   :  { %p1864_p1 = scmp.ne.s32.totalorder %s2132_s28, %s1863_s30  ;;  %p1869_p3 = scmp.lt.s32.totalorder %s1863_s30, %s1863_s30 }
  0x62   :  { %p1870_p4 = por %p1869_p3, %p1868_p2 }
  0x64   :  { %p1871_p5 = pnand %p1870_p4, %p1864_p1 }
  0x66   :  { %1874 = shalt.err (!%p1871_p5)
}
  0x67   :  { %s1987_s5 = smov 256   ;;  %s1988_s1 = smov 16  }
  0x68   :  { %99 = dma.hbm_to_vmem [thread:$0]  %s2421_s8, 5376, %s2132_s28, [#allocation12], %s1987_s5, %s1987_s5, %s1988_s1  }
  0x69   :  { %1963 = dma.done.wait [#allocation3], 128  }
  0x6a   :  { %1964 = vsyncadd [#allocation3], 4294967168 }
  0x6b   :  { %1965 = dma.done.wait [#allocation6], 1152  }
  0x6c   :  { %1966 = vsyncadd [#allocation6], 4294966144 }
  0x6d   :  { %1967 = dma.done.wait [#allocation9], 1280  }
  0x6e   :  { %1968 = vsyncadd [#allocation9], 4294966016 }
  0x6f   :  { %1969 = dma.done.wait [#allocation12], 5376  }
  0x70   :  { %1970 = vsyncadd [#allocation12], 4294961920  ;;  %v1989_v0 = vmov 0.0   ;;  %vm1990_vm0 = vmmov 0   ;;  %v1617_v1 = vld [vmem:[#allocation10] sm:$0xff]   ;;  %v1618_v2 = vld [vmem:[#allocation10 + $0x8] sm:$0xff]   ;;  %v347_v31 = vlaneseq }
  0x71   :  { %1575 = vmatprep.subr.bf16.mxu1 %v1989_v0  ;;  %1591 = vmatprep.mubr.msk.bf16.mxu1 %vm1990_vm0, %v1989_v0  ;;  %v1619_v3 = vld [vmem:[#allocation10 + $0x10] sm:$0xff]   ;;  %v1625_v5 = vld [vmem:[#allocation8 + $0x8] sm:$0xff]   ;;  %vm152_vm1 = vcmask 261120   ;;  %v2172_v10 = vld [vmem:[#allocation7 + $0x10] sm:$0xff]  ;;  %v1991_v29 = vmov 1966171168  }
  0x72   :  { %1576 = vmatpush3.bf16.msra.mxu1 %v1617_v1  ;;  %v1623_v4 = vld [vmem:[#allocation8] sm:$0xff]   ;;  %v1620_v6 = vld [vmem:[#allocation10 + $0x18] sm:$0xff]   ;;  %v2174_v11 = vld [vmem:[#allocation7 + $0x18] sm:$0xff]  ;;  %v345_v30 = vunpack.c.l.s4 %v1991_v29  ;;  %v2195_v37 = vshrl.u32 %v347_v31, 7  ;;  %vm521_vm2 = vcmask 1041409   ;;  %vm523_vm3 = vcmask 1042434  }
  0x73   :  { %1577 = vmatprep.subr.bf16.mxu1 %v1989_v0  ;;  %1563 = vmatprep.subr.bf16.mxu0 %v1623_v4  ;;  %v2166_v7 = vld [vmem:[#allocation7] sm:$0xff]  ;;  %v2168_v8 = vld [vmem:[#allocation7 + $0x8] sm:$0xff]  ;;  %v133_v13 = vpack.c.bf16 %v2174_v11, %v2172_v10  ;;  %v1621_v15 = vld [vmem:[#allocation10 + $0x20] sm:$0xff]   ;;  %vm525_vm4 = vcmask 1043459   ;;  %vm527_vm5 = vcmask 1044484   ;;  %vm529_vm6 = vcmask 1045509  }
  0x74   :  { %1564 = vmatpush3.bf16.msra.mxu0 %v1623_v4  ;;  %v132_v9 = vpack.c.bf16 %v2168_v8, %v2166_v7  ;;  %v2176_v12 = vld [vmem:[#allocation7 + $0x20] sm:$0xff]  ;;  %v2180_v14 = vld [vmem:[#allocation7 + $0x28] sm:$0xff]  ;;  %v2185_v17 = vld [vmem:[#allocation7 + $0x30] sm:$0xff]  ;;  %v346_v36 = vunpack.c.0.s8 %v345_v30  ;;  %v2202_v47 = vsub.s32 0, %v2195_v37  ;;  %vm531_vm7 = vcmask 1046534  }
  0x75   :  { %1565 = vmatprep.subr.bf16.mxu0 %v1625_v5  ;;  %v134_v16 = vpack.c.bf16 %v2180_v14, %v2176_v12  ;;  %v2187_v18 = vld [vmem:[#allocation7 + $0x38] sm:$0xff]  ;;  %v1624_v20 = vld [vmem:[#allocation10 + $0x30] sm:$0xff]   ;;  %v1626_v22 = vld [vmem:[#allocation10 + $0x38] sm:$0xff]   ;;  %vm533_vm8 = vcmask 1047559   ;;  %vm536_vm9 = vcmask 64512   ;;  %vm1122_vm10 = vcmask 1041408  }
  0x76   :  { %1578 = vmatpush3.bf16.msra.mxu1 %v1618_v2  ;;  %1567 = vmatprep.mubr.msk.bf16.mxu0 %vm152_vm1, %v132_v9  ;;  %v1622_v19 = vld [vmem:[#allocation10 + $0x28] sm:$0xff]   ;;  %v135_v21 = vpack.c.bf16 %v2187_v18, %v2185_v17  ;;  %v121_v23 = vld [vmem:[#allocation2] sm:$0xff]  ;;  %v349_v39 = vsub.s32 %v346_v36, %v2195_v37  ;;  %vm1118_vm11 = vcmask 31744  }
  0x77   :  { %1579 = vmatprep.subr.bf16.mxu1 %v1989_v0  ;;  %v230_v24 = vpack.c.bf16 %v121_v23, %v121_v23  ;;  %v1483_v38 = vld [vmem:[%s2419_s6] ss:$0 sm:$0xff] }
  0x78   :  { %1566 = vmatpush3.bf16.msra.mxu0 %v1625_v5 }
  0x7a   :  { %1580 = vmatpush3.bf16.msra.mxu1 %v1619_v3 }
  0x7b   :  { %1581 = vmatprep.subr.bf16.mxu1 %v1989_v0  ;;  %1568 = vmatmul.mubr.msk.bf16.vlgmr.msra.gmra.mrb[0].mxu0 %vm152_vm1, %v133_v13 }
  0x7c   :  { %1571 = vmatprep.mubr.msk.bf16.mxu0 %vm152_vm1, %v134_v16 }
  0x7e   :  { %1582 = vmatpush3.bf16.msra.mxu1 %v1620_v6 }
  0x7f   :  { %1583 = vmatprep.subr.bf16.mxu1 %v1989_v0 }
  0x82   :  { %1584 = vmatpush3.bf16.msra.mxu1 %v1621_v15 }
  0x83   :  { %1585 = vmatprep.subr.bf16.mxu1 %v1989_v0  ;;  %1572 = vmatmul.mubr.msk.bf16.gmra.mrb[4].mxu0 %vm152_vm1, %v135_v21 }
  0x86   :  { %1586 = vmatpush3.bf16.msra.mxu1 %v1622_v19  ;;  %v1492_v19 = vld [vmem:[%s2420_s7] ss:$0 sm:$0xff] }
  0x87   :  { %1587 = vmatprep.subr.bf16.mxu1 %v1989_v0 }
  0x8a   :  { %1588 = vmatpush3.bf16.msra.mxu1 %v1624_v20 }
  0x8b   :  { %1589 = vmatprep.subr.bf16.mxu1 %v1989_v0 }
  0x8e   :  { %1590 = vmatpush3.bf16.msra.mxu1 %v1626_v22 }
  0x91   :  { %1592 = vmatmul.mubr.bf16.vlgmr.msra.gmra.mrb[0].mxu1 %v230_v24 }
 0x14e   :  { %v1569_v25 = vpop.f32.mrb[0].mxu0 }
 0x14f   :  { %v199_v26 = vpop.f32.mrb[1].mxu0 }
 0x150   :  { %v1570_v27 = vpop.f32.mrb[2].mxu0 }
 0x151   :  { %v202_v28 = vpop.f32.mrb[3].mxu0 }
 0x156   :  { %v1573_v32 = vpop.f32.mrb[4].mxu0 }
 0x157   :  { %v215_v33 = vpop.f32.mrb[5].mxu0 }
 0x158   :  { %v1574_v34 = vpop.f32.mrb[6].mxu0 }
 0x159   :  { %v218_v35 = vpop.f32.mrb[7].mxu0 }
 0x164   :  { %v336_v40 = vpop.f32.mrb[0].mxu1 }
 0x165   :  { %v337_v41 = vadd.f32 %v1483_v38, %v336_v40  ;;  %v1593_v42 = vpop.f32.mrb[1].mxu1  ;;  %v488_v38 = vand.u32 127, %v347_v31 }
 0x166   :  { %v339_v43 = vpop.f32.mrb[2].mxu1 }
 0x167   :  { %v343_v44 = vcombine.high %v337_v41, %v337_v41  ;;  %v350_v45 = vrot.slane %v337_v41, %v349_v39  ;;  %v1594_v46 = vpop.f32.mrb[3].mxu1  ;;  %v2217_v40 = vsub.s32 %v488_v38, %v2195_v37 }
 0x169   :  { %v357_v48 = vrot.slane %v343_v44, %v349_v39  ;;  %v358_v49 = vcombine.high %v350_v45, %v350_v45  ;;  %v366_v50 = vrot.slane %v350_v45, %v349_v39 }
 0x16b   :  { %v359_v51 = vcombine.high %v357_v48, %v357_v48  ;;  %v388_v52 = vcombine.high %v366_v50, %v366_v50  ;;  %v395_v53 = vrot.slane %v366_v50, %v2202_v47  ;;  %v380_v54 = vrot.slane %v358_v49, %v349_v39 }
 0x16c   :  { %v373_v55 = vrot.slane %v357_v48, %v349_v39 }
 0x16d   :  { %v403_v56 = vrot.slane %v388_v52, %v2202_v47  ;;  %v432_v57 = vadd.f32 %v395_v53, %v199_v26  ;;  %v390_v58 = vcombine.high %v380_v54, %v380_v54  ;;  %v399_v59 = vrot.slane %v380_v54, %v2202_v47 }
 0x16e   :  { %v389_v60 = vcombine.high %v373_v55, %v373_v55  ;;  %v411_v61 = vrot.slane %v373_v55, %v2202_v47  ;;  %v387_v62 = vrot.slane %v359_v51, %v349_v39 }
 0x16f   :  { %v434_v63 = vadd.f32 %v1569_v25, %v403_v56  ;;  %1693 = vtanh.f32 %v432_v57  ;;  %v407_v0 = vrot.slane %v390_v58, %v2202_v47  ;;  %v433_v1 = vadd.f32 %v399_v59, %v202_v28 }
 0x170   :  { %v419_v2 = vrot.slane %v389_v60, %v2202_v47  ;;  %v436_v3 = vadd.f32 %v411_v61, %v215_v33  ;;  %v391_v4 = vcombine.high %v387_v62, %v387_v62  ;;  %v415_v5 = vrot.slane %v387_v62, %v2202_v47 }
 0x171   :  { %1695 = vtanh.f32 %v434_v63  ;;  %v435_v6 = vadd.f32 %v1570_v27, %v407_v0  ;;  %v1992_v0 = vmov 0  }
 0x172   :  { %1697 = vtanh.f32 %v433_v1  ;;  %v438_v9 = vadd.f32 %v1573_v32, %v419_v2  ;;  %v423_v13 = vrot.slane %v391_v4, %v2202_v47  ;;  %v437_v15 = vadd.f32 %v415_v5, %v218_v35  ;;  %1616 = vset.pattern.permute.xlu0 %v1992_v0  ;;  %1615 = vset.pattern.permute.xlu1 %v1992_v0 }
 0x173   :  { %1699 = vtanh.f32 %v435_v6  ;;  %v2238_v1 = vsub.s32 1, %v2195_v37  ;;  %v2241_v2 = vsub.s32 2, %v2195_v37 }
 0x174   :  { %v439_v16 = vadd.f32 %v1574_v34, %v423_v13  ;;  %1701 = vtanh.f32 %v436_v3  ;;  %v2244_v3 = vsub.s32 3, %v2195_v37  ;;  %v559_v13 = vsub.s32 4, %v2195_v37 }
 0x175   :  { %1703 = vtanh.f32 %v437_v15 }
 0x176   :  { %1705 = vtanh.f32 %v438_v9 }
 0x177   :  { %1707 = vtanh.f32 %v439_v16 }
 0x179   :  { %v1694_v20 = vpop.eup %1693 }
 0x17a   :  { %v455_v21 = vmul.f32 %v1694_v20, %v1492_v19 }
 0x17b   :  { %v1696_v22 = vpop.eup %1695 }
 0x17c   :  { %v1698_v23 = vpop.eup %1697  ;;  %463 = vadd.xlane.f32.xlu0 %v455_v21  ;;  %v457_v24 = vmul.f32 %v1696_v22, %v1492_v19 }
 0x17d   :  { %v1700_v25 = vpop.eup %1699  ;;  %v456_v26 = vmul.f32 %v1698_v23, %v1492_v19  ;;  %v563_v23 = vsub.s32 5, %v2195_v37 }
 0x17e   :  { %467 = vadd.xlane.f32.xlu1 %v457_v24  ;;  %v1702_v27 = vpop.eup %1701  ;;  %v458_v28 = vmul.f32 %v1700_v25, %v1492_v19 }
 0x17f   :  { %v1704_v29 = vpop.eup %1703  ;;  %v459_v30 = vmul.f32 %v1702_v27, %v1492_v19  ;;  %v567_v27 = vsub.s32 6, %v2195_v37 }
 0x180   :  { %465 = vadd.xlane.f32.xlu0 %v456_v26  ;;  %v1706_v32 = vpop.eup %1705  ;;  %v460_v33 = vmul.f32 %v1704_v29, %v1492_v19 }
 0x181   :  { %v1708_v34 = vpop.eup %1707  ;;  %v461_v35 = vmul.f32 %v1706_v32, %v1492_v19  ;;  %v571_v32 = vsub.s32 7, %v2195_v37  ;;  %v1650_v37 = vld [vmem:[#allocation11 + $0x6c] ss:$16 sps:$4 sm:$0xff]  }
 0x182   :  { %469 = vadd.xlane.f32.xlu1 %v458_v28  ;;  %v462_v36 = vmul.f32 %v1708_v34, %v1492_v19 }
 0x184   :  { %471 = vadd.xlane.f32.xlu0 %v459_v30 }
 0x186   :  { %473 = vadd.xlane.f32.xlu1 %v460_v33 }
 0x188   :  { %475 = vadd.xlane.f32.xlu0 %v461_v35 }
 0x18a   :  { %477 = vadd.xlane.f32.xlu1 %v462_v36 }
 0x209   :  { %v464_v39 = vpop.xlane.xlu0 %463 }
 0x20a   :  { %v492_v43 = vrot.slane %v464_v39, %v2217_v40 }
 0x20b   :  { %v468_v41 = vpop.xlane.xlu1 %467 }
 0x20c   :  { %v500_v45 = vrot.slane %v468_v41, %v2217_v40 }
 0x20d   :  { %v466_v42 = vpop.xlane.xlu0 %465 }
 0x20e   :  { %v496_v44 = vrot.slane %v466_v42, %v2217_v40 }
 0x20f   :  { %v470_v46 = vpop.xlane.xlu1 %469 }
 0x210   :  { %v522_v48 = vsel %vm521_vm2, %v496_v44, %v492_v43  ;;  %v504_v31 = vrot.slane %v470_v46, %v2217_v40 }
 0x211   :  { %v524_v49 = vsel %vm523_vm3, %v500_v45, %v522_v48  ;;  %v472_v50 = vpop.xlane.xlu0 %471 }
 0x212   :  { %v526_v51 = vsel %vm525_vm4, %v504_v31, %v524_v49  ;;  %v508_v52 = vrot.slane %v472_v50, %v2217_v40 }
 0x213   :  { %v474_v53 = vpop.xlane.xlu1 %473 }
 0x214   :  { %v528_v54 = vsel %vm527_vm5, %v508_v52, %v526_v51  ;;  %v512_v55 = vrot.slane %v474_v53, %v2217_v40 }
 0x215   :  { %v476_v56 = vpop.xlane.xlu0 %475 }
 0x216   :  { %v516_v57 = vrot.slane %v476_v56, %v2217_v40  ;;  %v530_v58 = vsel %vm529_vm6, %v512_v55, %v528_v54 }
 0x217   :  { %v478_v59 = vpop.xlane.xlu1 %477 }
 0x218   :  { %v520_v60 = vrot.slane %v478_v59, %v2217_v40  ;;  %v532_v61 = vsel %vm531_vm7, %v516_v57, %v530_v58 }
 0x21a   :  { %v534_v62 = vsel %vm533_vm8, %v520_v60, %v532_v61 }
 0x21b   :  { %v537_v63 = vsel %vm536_vm9, %v534_v62, -inf }
 0x21c   :  { %538 = vmax.xlane.f32.xlu0 %v537_v63 }
 0x2a9   :  { %v539_v4 = vpop.xlane.xlu0 %538 }
 0x2aa   :  { %v544_v5 = vrot.slane %v539_v4, %v2202_v47  ;;  %v548_v6 = vrot.slane %v539_v4, %v2238_v1  ;;  %v552_v9 = vrot.slane %v539_v4, %v2241_v2  ;;  %v556_v15 = vrot.slane %v539_v4, %v2244_v3 }
 0x2ab   :  { %v560_v24 = vrot.slane %v539_v4, %v559_v13  ;;  %v564_v28 = vrot.slane %v539_v4, %v563_v23  ;;  %v568_v33 = vrot.slane %v539_v4, %v567_v27 }
 0x2ac   :  { %v581_v16 = vsub.f32 %v464_v39, %v544_v5  ;;  %v582_v19 = vsub.f32 %v466_v42, %v548_v6  ;;  %v583_v20 = vsub.f32 %v468_v41, %v552_v9  ;;  %v584_v25 = vsub.f32 %v470_v46, %v556_v15 }
 0x2ad   :  { %v585_v29 = vsub.f32 %v472_v50, %v560_v24  ;;  %v586_v34 = vsub.f32 %v474_v53, %v564_v28  ;;  %v572_v39 = vrot.slane %v539_v4, %v571_v32  ;;  %v587_v41 = vsub.f32 %v476_v56, %v568_v33 }
 0x2ae   :  { %v589_v21 = vmul.f32 1.442695, %v581_v16  ;;  %v591_v22 = vmul.f32 1.442695, %v582_v19  ;;  %v593_v26 = vmul.f32 1.442695, %v583_v20 }
 0x2af   :  { %v595_v30 = vmul.f32 1.442695, %v584_v25  ;;  %v597_v35 = vmul.f32 1.442695, %v585_v29  ;;  %v599_v42 = vmul.f32 1.442695, %v586_v34  ;;  %v588_v44 = vsub.f32 %v478_v59, %v572_v39 }
 0x2b0   :  { %1709 = vpow2.f32 %v589_v21  ;;  %v601_v45 = vmul.f32 1.442695, %v587_v41 }
 0x2b1   :  { %1711 = vpow2.f32 %v591_v22  ;;  %v603_v48 = vmul.f32 1.442695, %v588_v44  ;;  %v1627_v44 = vld [vmem:[#allocation11 + $0x40] ss:$16 sps:$4 sm:$0xff]  }
 0x2b2   :  { %1713 = vpow2.f32 %v593_v26 }
 0x2b3   :  { %1715 = vpow2.f32 %v595_v30 }
 0x2b4   :  { %1717 = vpow2.f32 %v597_v35 }
 0x2b5   :  { %1719 = vpow2.f32 %v599_v42  ;;  %v1629_v42 = vld [vmem:[#allocation11 + $0x44] ss:$16 sps:$4 sm:$0xff]  }
 0x2b6   :  { %1721 = vpow2.f32 %v601_v45  ;;  %1135 = vmatprep.subr.bf16.mxu0 %v1629_v42  ;;  %v1687_v42 = vld [vmem:[#allocation11 + $0xc] ss:$16 sps:$4 sm:$0xff]  }
 0x2b7   :  { %1723 = vpow2.f32 %v603_v48  ;;  %1136 = vmatpush1.bf16.msra.mxu0 %v1627_v44  ;;  %v1684_v44 = vld [vmem:[#allocation11 + $0x12c] ss:$16 sps:$4 sm:$0xff]  }
 0x2ba   :  { %v1710_v36 = vpop.eup %1709 }
 0x2bb   :  { %v1712_v38 = vpop.eup %1711  ;;  %614 = vperm.xlu1 %1615, %v1710_v36  }
 0x2bc   :  { %617 = vperm.xlu0 %1616, %v1712_v38   ;;  %v1714_v43 = vpop.eup %1713 }
 0x2bd   :  { %v1716_v46 = vpop.eup %1715 }
 0x2be   :  { %v1718_v31 = vpop.eup %1717 }
 0x2bf   :  { %620 = vperm.xlu1 %1615, %v1714_v43   ;;  %v1720_v49 = vpop.eup %1719 }
 0x2c0   :  { %v2262_v50 = vpop.eup %1721 }
 0x2c1   :  { %v2265_v51 = vpop.eup %1723 }
 0x2c3   :  { %623 = vperm.xlu1 %1615, %v1716_v46  }
 0x2c7   :  { %626 = vperm.xlu1 %1615, %v1718_v31  }
 0x2cb   :  { %629 = vperm.xlu1 %1615, %v1720_v49  }
 0x2cf   :  { %632 = vperm.xlu1 %1615, %v2262_v50  }
 0x2d3   :  { %635 = vperm.xlu1 %1615, %v2265_v51  }
 0x33a   :  { %v615_v52 = vpop.permute.xlu1 %614 }
 0x33b   :  { %v618_v56 = vpop.permute.xlu0 %617  ;;  %v640_v59 = vrot.slane %v615_v52, %v2217_v40  ;;  %v1630_v52 = vld [vmem:[#allocation11 + $0x60] ss:$16 sps:$4 sm:$0xff]  }
 0x33c   :  { %v644_v58 = vrot.slane %v618_v56, %v2217_v40  ;;  %v1636_v56 = vld [vmem:[#allocation11 + $0xa0] ss:$16 sps:$4 sm:$0xff]  }
 0x33e   :  { %v621_v53 = vpop.permute.xlu1 %620  ;;  %v669_v4 = vsel %vm521_vm2, %v644_v58, %v640_v59  ;;  %v1639_v58 = vld [vmem:[#allocation11 + $0xc0] ss:$16 sps:$4 sm:$0xff]   ;;  %v1642_v59 = vld [vmem:[#allocation11 + $0x48] ss:$16 sps:$4 sm:$0xff]  }
 0x33f   :  { %v648_v60 = vrot.slane %v621_v53, %v2217_v40 }
 0x341   :  { %v670_v6 = vsel %vm523_vm3, %v648_v60, %v669_v4  ;;  %v1647_v60 = vld [vmem:[#allocation11 + $0xe4] ss:$16 sps:$4 sm:$0xff]  }
 0x342   :  { %v624_v54 = vpop.permute.xlu1 %623  ;;  %v1659_v4 = vld [vmem:[#allocation11 + $0x124] ss:$16 sps:$4 sm:$0xff]  }
 0x343   :  { %v652_v61 = vrot.slane %v624_v54, %v2217_v40  ;;  %v1633_v54 = vld [vmem:[#allocation11 + $0x80] ss:$16 sps:$4 sm:$0xff]  }
 0x345   :  { %v671_v15 = vsel %vm525_vm4, %v652_v61, %v670_v6  ;;  %v1645_v61 = vld [vmem:[#allocation11 + $0xe0] ss:$16 sps:$4 sm:$0xff]   ;;  %v1662_v6 = vld [vmem:[#allocation11 + $0xac] ss:$16 sps:$4 sm:$0xff]  }
 0x346   :  { %v627_v55 = vpop.permute.xlu1 %626 }
 0x347   :  { %v656_v62 = vrot.slane %v627_v55, %v2217_v40 }
 0x349   :  { %v672_v16 = vsel %vm527_vm5, %v656_v62, %v671_v15  ;;  %v1651_v62 = vld [vmem:[#allocation11 + $0x100] ss:$16 sps:$4 sm:$0xff]   ;;  %v1660_v15 = vld [vmem:[#allocation11 + $0xa8] ss:$16 sps:$4 sm:$0xff]  }
 0x34a   :  { %v630_v57 = vpop.permute.xlu1 %629 }
 0x34b   :  { %v660_v5 = vrot.slane %v630_v57, %v2217_v40 }
 0x34d   :  { %v673_v20 = vsel %vm529_vm6, %v660_v5, %v672_v16  ;;  %v1657_v5 = vld [vmem:[#allocation11 + $0x120] ss:$16 sps:$4 sm:$0xff]  }
 0x34e   :  { %v633_v63 = vpop.permute.xlu1 %632 }
 0x34f   :  { %v664_v9 = vrot.slane %v633_v63, %v2217_v40  ;;  %v1654_v63 = vld [vmem:[#allocation11 + $0x88] ss:$16 sps:$4 sm:$0xff]  }
 0x351   :  { %v674_v22 = vsel %vm531_vm7, %v664_v9, %v673_v20  ;;  %v932_v9 = vld [vmem:[#allocation11 + $0x140] sm:$0x33] }
 0x352   :  { %v636_v19 = vpop.permute.xlu1 %635  ;;  %v1528_v16 = vcombine.high %v932_v9, %v932_v9 }
 0x353   :  { %v668_v21 = vrot.slane %v636_v19, %v2217_v40  ;;  %v1527_v19 = vcombine.low %v932_v9, %v932_v9 }
 0x355   :  { %v675_v24 = vsel %vm533_vm8, %v668_v21, %v674_v22  ;;  %v1124_v20 = vsel %vm1122_vm10, %v1527_v19, 0  ;;  %v131_v21 = vld [vmem:[%s2416_s3] sm:$0xff]  ;;  %s1993_s3 = smov [#allocation17]  }
 0x356   :  { %v677_v25 = vsel %vm536_vm9, %v675_v24, 0.0  ;;  %v1494_v22 = vcombine.high %v131_v21, %v131_v21  ;;  %v1669_v24 = vld [vmem:[#allocation11 + $0xcc] ss:$16 sps:$4 sm:$0xff]   ;;  %s1454_s16 = sshll.u32 %s1993_s3, 4  ;;  %s1455_s16 = int_to_ptr.vmem [resolvable:$true] %s1454_s16 }
 0x357   :  { %678 = vadd.xlane.f32.xlu1 %v677_v25  ;;  %v1493_v25 = vcombine.low %v131_v21, %v131_v21  ;;  %s1875_s17 = scalar_lea.vmem %s1455_s16, 128  ;;  %p1880_p7 = scmp.lt.s32.totalorder %s1455_s16, %s1455_s16 }
 0x358   :  { %1532 = vmatprep.mubr.msk.bf16.mxu0 %vm1118_vm11, %v1494_v22  ;;  %1534 = vmatprep.mubr.msk.bf16.mxu1 %vm1118_vm11, %v1494_v22  ;;  %p1876_p6 = scmp.ne.s32.totalorder %s1455_s16, %s1875_s17  ;;  %p1881_p8 = scmp.lt.s32.totalorder %s1875_s17, %s1875_s17 }
 0x35a   :  { %p1882_p9 = por %p1881_p8, %p1880_p7 }
 0x35c   :  { %p1883_p10 = pnand %p1882_p9, %p1876_p6 }
 0x3e4   :  { %v679_v26 = vpop.xlane.xlu1 %678 }
 0x3e5   :  { %1725 = vrcp.f32 %v679_v26  ;;  %v1667_v26 = vld [vmem:[#allocation11 + $0xc8] ss:$16 sps:$4 sm:$0xff]  }
 0x3ef   :  { %v1726_v28 = vpop.eup %1725 }
 0x3f0   :  { %v685_v29 = vrot.slane %v1726_v28, %v2202_v47  ;;  %v689_v33 = vrot.slane %v1726_v28, %v2238_v1  ;;  %v693_v35 = vrot.slane %v1726_v28, %v2241_v2  ;;  %v697_v41 = vrot.slane %v1726_v28, %v2244_v3 }
 0x3f1   :  { %v701_v48 = vrot.slane %v1726_v28, %v559_v13  ;;  %v1638_v13 = vld [vmem:[#allocation11 + $0xa4] ss:$16 sps:$4 sm:$0xff]  }
 0x3f2   :  { %v722_v30 = vmul.f32 %v1710_v36, %v685_v29  ;;  %v723_v34 = vmul.f32 %v1712_v38, %v689_v33  ;;  %v724_v39 = vmul.f32 %v1714_v43, %v693_v35  ;;  %v725_v45 = vmul.f32 %v1716_v46, %v697_v41  ;;  %v1632_v36 = vld [vmem:[#allocation11 + $0x64] ss:$16 sps:$4 sm:$0xff]   ;;  %v1675_v33 = vld [vmem:[#allocation11 + $0xec] ss:$16 sps:$4 sm:$0xff]   ;;  %v1679_v41 = vld [vmem:[#allocation11 + $0x108] ss:$16 sps:$4 sm:$0xff]  }
 0x3f3   :  { %v726_v53 = vmul.f32 %v1718_v31, %v701_v48  ;;  %v705_v38 = vrot.slane %v1726_v28, %v563_v23  ;;  %1137 = vmatprep.subr.bf16.mxu0 %v1632_v36  ;;  %v1635_v43 = vld [vmem:[#allocation11 + $0x84] ss:$16 sps:$4 sm:$0xff]   ;;  %v709_v46 = vrot.slane %v1726_v28, %v567_v27  ;;  %v713_v31 = vrot.slane %v1726_v28, %v571_v32  ;;  %v1644_v27 = vld [vmem:[#allocation11 + $0x4c] ss:$16 sps:$4 sm:$0xff]   ;;  %v1648_v32 = vld [vmem:[#allocation11 + $0x68] ss:$16 sps:$4 sm:$0xff]  }
 0x3f4   :  { %739 = vperm.xlu0 %1616, %v722_v30   ;;  %1138 = vmatpush1.bf16.msra.mxu0 %v1630_v52  ;;  %v1641_v23 = vld [vmem:[#allocation11 + $0xc4] ss:$16 sps:$4 sm:$0xff]   ;;  %v1670_v28 = vld [vmem:[#allocation11] ss:$16 sps:$4 sm:$0xff]   ;;  %v1673_v30 = vld [vmem:[#allocation11 + $0xe8] ss:$16 sps:$4 sm:$0xff]  }
 0x3f5   :  { %v727_v55 = vmul.f32 %v1720_v49, %v705_v38  ;;  %1139 = vmatprep.subr.bf16.mxu0 %v1635_v43  ;;  %v728_v57 = vmul.f32 %v2262_v50, %v709_v46  ;;  %v729_v49 = vmul.f32 %v2265_v51, %v713_v31  ;;  %1176 = vmatprep.subr.bf16.mxu1 %v1644_v27  ;;  %v1653_v50 = vld [vmem:[#allocation11 + $0x104] ss:$16 sps:$4 sm:$0xff]   ;;  %v1656_v51 = vld [vmem:[#allocation11 + $0x8c] ss:$16 sps:$4 sm:$0xff]   ;;  %v1682_v48 = vld [vmem:[#allocation11 + $0x128] ss:$16 sps:$4 sm:$0xff]  }
 0x3f6   :  { %1177 = vmatpush1.bf16.msra.mxu1 %v1642_v59  ;;  %v1672_v29 = vld [vmem:[#allocation11 + $0x4] ss:$16 sps:$4 sm:$0xff]   ;;  %v1681_v35 = vld [vmem:[#allocation11 + $0x10c] ss:$16 sps:$4 sm:$0xff]  }
 0x3f7   :  { %1178 = vmatprep.subr.bf16.mxu1 %v1650_v37 }
 0x3f8   :  { %742 = vperm.xlu0 %1616, %v723_v34   ;;  %1140 = vmatpush1.bf16.msra.mxu0 %v1633_v54  ;;  %v1678_v34 = vld [vmem:[#allocation11 + $0x24] ss:$16 sps:$4 sm:$0xff]  }
 0x3f9   :  { %1141 = vmatprep.subr.bf16.mxu0 %v1638_v13 }
 0x3fa   :  { %1179 = vmatpush1.bf16.msra.mxu1 %v1648_v32 }
 0x3fb   :  { %1180 = vmatprep.subr.bf16.mxu1 %v1656_v51 }
 0x3fc   :  { %745 = vperm.xlu0 %1616, %v724_v39   ;;  %1142 = vmatpush1.bf16.msra.mxu0 %v1636_v56  ;;  %v1676_v39 = vld [vmem:[#allocation11 + $0x20] ss:$16 sps:$4 sm:$0xff]  }
 0x3fd   :  { %1143 = vmatprep.subr.bf16.mxu0 %v1641_v23 }
 0x3fe   :  { %1181 = vmatpush1.bf16.msra.mxu1 %v1654_v63 }
 0x3ff   :  { %1182 = vmatprep.subr.bf16.mxu1 %v1662_v6 }
 0x400   :  { %748 = vperm.xlu0 %1616, %v725_v45   ;;  %1144 = vmatpush1.bf16.msra.mxu0 %v1639_v58  ;;  %v933_v45 = vld [vmem:[#allocation11 + $0x148] sm:$0x33] }
 0x401   :  { %1145 = vmatprep.subr.bf16.mxu0 %v1647_v60  ;;  %v1530_v36 = vcombine.high %v933_v45, %v933_v45  ;;  %v1529_v52 = vcombine.low %v933_v45, %v933_v45 }
 0x402   :  { %1183 = vmatpush1.bf16.msra.mxu1 %v1660_v15 }
 0x403   :  { %1184 = vmatprep.subr.bf16.mxu1 %v1669_v24 }
 0x404   :  { %751 = vperm.xlu0 %1616, %v726_v53   ;;  %1146 = vmatpush1.bf16.msra.mxu0 %v1645_v61  ;;  %v1130_v53 = vsel %vm1122_vm10, %v1529_v52, 0 }
 0x405   :  { %1147 = vmatprep.subr.bf16.mxu0 %v1653_v50 }
 0x406   :  { %1185 = vmatpush1.bf16.msra.mxu1 %v1667_v26 }
 0x407   :  { %1186 = vmatprep.subr.bf16.mxu1 %v1675_v33 }
 0x408   :  { %754 = vperm.xlu0 %1616, %v727_v55   ;;  %1148 = vmatpush1.bf16.msra.mxu0 %v1651_v62 }
 0x409   :  { %1149 = vmatprep.subr.bf16.mxu0 %v1659_v4 }
 0x40a   :  { %1187 = vmatpush1.bf16.msra.mxu1 %v1673_v30 }
 0x40b   :  { %1188 = vmatprep.subr.bf16.mxu1 %v1681_v35 }
 0x40c   :  { %757 = vperm.xlu0 %1616, %v728_v57   ;;  %1150 = vmatpush1.bf16.msra.mxu0 %v1657_v5 }
 0x40d   :  { %1531 = vmatprep.subr.msk.bf16.mxu0 %vm1122_vm10, %v1528_v16 }
 0x40e   :  { %1189 = vmatpush1.bf16.msra.mxu1 %v1679_v41 }
 0x40f   :  { %1190 = vmatprep.subr.bf16.mxu1 %v1684_v44 }
 0x410   :  { %760 = vperm.xlu0 %1616, %v729_v49   ;;  %1152 = vmatpush1.bf16.msra.mxu0 %v1124_v20 }
 0x411   :  { %1284 = vmatprep.subr.bf16.mxu0 %v1672_v29 }
 0x412   :  { %1191 = vmatpush1.bf16.msra.mxu1 %v1682_v48 }
 0x413   :  { %1168 = vmatmul.mubr.bf16.vlgmr.msra.gmra.mrb[8].mxu0 %v1493_v25  ;;  %1533 = vmatprep.subr.msk.bf16.mxu1 %vm1122_vm10, %v1530_v36 }
 0x414   :  { %1316 = vmatprep.mubr.bf16.mxu0 %v1992_v0  ;;  %1285 = vmatpush1.bf16.msra.mxu0 %v1670_v28 }
 0x415   :  { %1286 = vmatprep.subr.bf16.mxu0 %v1678_v34 }
 0x416   :  { %1193 = vmatpush1.bf16.msra.mxu1 %v1130_v53 }
 0x418   :  { %1287 = vmatpush1.bf16.msra.mxu0 %v1676_v39 }
 0x419   :  { %1325 = vmatprep.subr.bf16.mxu0 %v1687_v42  ;;  %1209 = vmatmul.mubr.bf16.vlgmr.msra.gmra.mrb[4].mxu1 %v1493_v25 }
 0x473   :  { %v740_v38 = vpop.permute.xlu0 %739 }
 0x474   :  { %v811_v43 = vmul.f32 %v740_v38, %v2166_v7  ;;  %v765_v15 = vrot.slane %v740_v38, %v2217_v40 }
 0x476   :  { %v819_v46 = vsel %vm152_vm1, %v811_v43, 0.0 }
 0x477   :  { %v743_v54 = vpop.permute.xlu0 %742  ;;  %v820_v31 = vrot.slane %v819_v46, 4 }
 0x478   :  { %v812_v55 = vmul.f32 %v743_v54, %v2168_v8  ;;  %v769_v63 = vrot.slane %v743_v54, %v2217_v40 }
 0x479   :  { %v821_v60 = vadd.f32 %v820_v31, %v819_v46 }
 0x47a   :  { %v826_v13 = vsel %vm152_vm1, %v812_v55, 0.0  ;;  %v794_v24 = vsel %vm521_vm2, %v769_v63, %v765_v15 }
 0x47b   :  { %v746_v56 = vpop.permute.xlu0 %745  ;;  %v827_v23 = vrot.slane %v826_v13, 4  ;;  %v822_v62 = vrot.slane %v821_v60, 2 }
 0x47c   :  { %v813_v57 = vmul.f32 %v746_v56, %v2172_v10  ;;  %v773_v6 = vrot.slane %v746_v56, %v2217_v40 }
 0x47d   :  { %v828_v7 = vadd.f32 %v827_v23, %v826_v13 }
 0x47e   :  { %v833_v58 = vsel %vm152_vm1, %v813_v57, 0.0  ;;  %v795_v29 = vsel %vm523_vm3, %v773_v6, %v794_v24 }
 0x47f   :  { %v834_v49 = vrot.slane %v833_v58, 4  ;;  %v749_v27 = vpop.permute.xlu0 %748  ;;  %v829_v51 = vrot.slane %v828_v7, 2 }
 0x480   :  { %v814_v59 = vmul.f32 %v749_v27, %v2174_v11  ;;  %v777_v16 = vrot.slane %v749_v27, %v2217_v40 }
 0x481   :  { %v835_v61 = vadd.f32 %v834_v49, %v833_v58  ;;  %v830_v21 = vadd.f32 %v829_v51, %v828_v7 }
 0x482   :  { %v840_v8 = vsel %vm152_vm1, %v814_v59, 0.0  ;;  %v796_v35 = vsel %vm525_vm4, %v777_v16, %v795_v29 }
 0x483   :  { %v841_v37 = vrot.slane %v840_v8, 4  ;;  %v752_v32 = vpop.permute.xlu0 %751  ;;  %v836_v4 = vrot.slane %v835_v61, 2  ;;  %v831_v44 = vrot.slane %v830_v21, 1 }
 0x484   :  { %v815_v50 = vmul.f32 %v752_v32, %v2176_v12  ;;  %v823_v12 = vadd.f32 %v822_v62, %v821_v60  ;;  %v781_v22 = vrot.slane %v752_v32, %v2217_v40 }
 0x485   :  { %v842_v10 = vadd.f32 %v841_v37, %v840_v8  ;;  %v837_v25 = vadd.f32 %v836_v4, %v835_v61  ;;  %v832_v23 = vadd.f32 %v831_v44, %v830_v21 }
 0x486   :  { %v847_v5 = vsel %vm152_vm1, %v815_v50, 0.0  ;;  %v824_v42 = vrot.slane %v823_v12, 1  ;;  %v797_v45 = vsel %vm527_vm5, %v781_v22, %v796_v35 }
 0x487   :  { %v843_v11 = vrot.slane %v842_v10, 2  ;;  %v755_v9 = vpop.permute.xlu0 %754  ;;  %v848_v19 = vrot.slane %v847_v5, 4  ;;  %v838_v36 = vrot.slane %v837_v25, 1  ;;  %v935_v50 = vpack.c.bf16 %v832_v23, %v832_v23 }
 0x488   :  { %v816_v20 = vmul.f32 %v755_v9, %v2180_v14  ;;  %v785_v33 = vrot.slane %v755_v9, %v2217_v40  ;;  %v825_v31 = vadd.f32 %v824_v42, %v823_v12 }
 0x489   :  { %v849_v26 = vadd.f32 %v848_v19, %v847_v5  ;;  %v844_v30 = vadd.f32 %v843_v11, %v842_v10  ;;  %v839_v27 = vadd.f32 %v838_v36, %v837_v25  ;;  %v1226_v15 = vunpack.c.l.b16 %v935_v50 }
 0x48a   :  { %v854_v28 = vsel %vm152_vm1, %v816_v20, 0.0  ;;  %v798_v54 = vsel %vm529_vm6, %v785_v33, %v797_v45  ;;  %v934_v51 = vpack.c.bf16 %v825_v31, %v825_v31  ;;  %v883_v11 = vsel %vm521_vm2, %v832_v23, %v825_v31 }
 0x48b   :  { %v758_v34 = vpop.permute.xlu0 %757  ;;  %v850_v39 = vrot.slane %v849_v26, 2  ;;  %v855_v14 = vrot.slane %v854_v28, 4  ;;  %v845_v43 = vrot.slane %v844_v30, 1  ;;  %v936_v10 = vpack.c.bf16 %v839_v27, %v839_v27 }
 0x48c   :  { %v817_v41 = vmul.f32 %v758_v34, %v2185_v17  ;;  %v789_v48 = vrot.slane %v758_v34, %v2217_v40  ;;  %v1225_v12 = vunpack.c.l.b16 %v934_v51  ;;  %v884_v21 = vsel %vm523_vm3, %v839_v27, %v883_v11 }
 0x48d   :  { %v851_v52 = vadd.f32 %v850_v39, %v849_v26  ;;  %v856_v53 = vadd.f32 %v855_v14, %v854_v28  ;;  %v846_v61 = vadd.f32 %v845_v43, %v844_v30  ;;  %v1227_v22 = vunpack.c.l.b16 %v936_v10 }
 0x48e   :  { %v861_v38 = vsel %vm152_vm1, %v817_v41, 0.0  ;;  %v799_v58 = vsel %vm531_vm7, %v789_v48, %v798_v54  ;;  %v1233_v33 = vsel %vm521_vm2, %v1226_v15, %v1225_v12  ;;  %v1685_v54 = vld [vmem:[#allocation11 + $0x8] ss:$16 sps:$4 sm:$0xff]  }
 0x48f   :  { %v862_v55 = vrot.slane %v861_v38, 4  ;;  %v761_v46 = vpop.permute.xlu0 %760  ;;  %v852_v13 = vrot.slane %v851_v52, 1  ;;  %v857_v56 = vrot.slane %v856_v53, 2  ;;  %v937_v4 = vpack.c.bf16 %v846_v61, %v846_v61 }
 0x490   :  { %v793_v17 = vrot.slane %v761_v46, %v2217_v40  ;;  %v818_v57 = vmul.f32 %v761_v46, %v2187_v18  ;;  %v885_v28 = vsel %vm525_vm4, %v846_v61, %v884_v21  ;;  %v1234_v14 = vsel %vm523_vm3, %v1227_v22, %v1233_v33  ;;  %v1691_v46 = vld [vmem:[#allocation11 + $0x2c] ss:$16 sps:$4 sm:$0xff]  }
 0x491   :  { %v863_v49 = vadd.f32 %v862_v55, %v861_v38  ;;  %v858_v59 = vadd.f32 %v857_v56, %v856_v53  ;;  %v853_v32 = vadd.f32 %v852_v13, %v851_v52  ;;  %v1228_v24 = vunpack.c.l.b16 %v937_v4  ;;  %v1689_v13 = vld [vmem:[#allocation11 + $0x28] ss:$16 sps:$4 sm:$0xff]  }
 0x492   :  { %v800_v60 = vsel %vm533_vm8, %v793_v17, %v799_v58  ;;  %v868_v7 = vsel %vm152_vm1, %v818_v57, 0.0 }
 0x493   :  { %v864_v8 = vrot.slane %v863_v49, 2  ;;  %v869_v37 = vrot.slane %v868_v7, 4  ;;  %802 = vst.msk [vmem:[#allocation16] sm:$0xff] %vm536_vm9, %v800_v60  ;;  %v859_v40 = vrot.slane %v858_v59, 1  ;;  %v938_v9 = vpack.c.bf16 %v853_v32, %v853_v32 }
 0x494   :  { %v886_v30 = vsel %vm527_vm5, %v853_v32, %v885_v28  ;;  %v1235_v44 = vsel %vm525_vm4, %v1228_v24, %v1234_v14 }
 0x495   :  { %v865_v18 = vadd.f32 %v864_v8, %v863_v49  ;;  %v870_v62 = vadd.f32 %v869_v37, %v868_v7  ;;  %v860_v63 = vadd.f32 %v859_v40, %v858_v59  ;;  %v1229_v29 = vunpack.c.l.b16 %v938_v9 }
 0x497   :  { %v866_v5 = vrot.slane %v865_v18, 1  ;;  %v871_v6 = vrot.slane %v870_v62, 2  ;;  %v939_v16 = vpack.c.bf16 %v860_v63, %v860_v63  ;;  %v887_v39 = vsel %vm529_vm6, %v860_v63, %v886_v30 }
 0x498   :  { %v1236_v36 = vsel %vm527_vm5, %v1229_v29, %v1235_v44 }
 0x499   :  { %v867_v19 = vadd.f32 %v866_v5, %v865_v18  ;;  %v872_v20 = vadd.f32 %v871_v6, %v870_v62  ;;  %v1230_v34 = vunpack.c.l.b16 %v939_v16 }
 0x49b   :  { %v940_v25 = vpack.c.bf16 %v867_v19, %v867_v19  ;;  %v873_v26 = vrot.slane %v872_v20, 1  ;;  %v888_v42 = vsel %vm531_vm7, %v867_v19, %v887_v39  ;;  %v1237_v52 = vsel %vm529_vm6, %v1230_v34, %v1236_v36 }
 0x49d   :  { %v874_v35 = vadd.f32 %v873_v26, %v872_v20  ;;  %v1231_v41 = vunpack.c.l.b16 %v940_v25 }
 0x49f   :  { %v941_v45 = vpack.c.bf16 %v874_v35, %v874_v35  ;;  %v889_v48 = vsel %vm533_vm8, %v874_v35, %v888_v42  ;;  %v1238_v38 = vsel %vm531_vm7, %v1231_v41, %v1237_v52 }
 0x4a0   :  { %891 = vst.msk [vmem:[#allocation17] sm:$0xff] %vm152_vm1, %v889_v48 }
 0x4a1   :  { %v1232_v53 = vunpack.c.l.b16 %v941_v45 }
 0x4a3   :  { %v1239_v43 = vsel %vm533_vm8, %v1232_v53, %v1238_v38 }
 0x4a4   :  { %v1240_v55 = vpack.c.b16 %v1239_v43, %v1239_v43 }
 0x4a6   :  { %1543 = vmatmul.mubr.msk.bf16.vlgmr.msra.gmra.mrb[12].mxu0 %vm152_vm1, %v1240_v55 }
 0x4a7   :  { %1326 = vmatpush1.bf16.msra.mxu0 %v1685_v54  ;;  %1357 = vmatprep.mubr.bf16.mxu0 %v1992_v0 }
 0x4a8   :  { %1327 = vmatprep.subr.bf16.mxu0 %v1691_v46 }
 0x4ab   :  { %1328 = vmatpush1.bf16.msra.mxu0 %v1689_v13 }
 0x4ae   :  { %1544 = vmatmul.mubr.msk.bf16.vlgmr.msra.gmra.mrb[16].mxu0 %vm152_vm1, %v1240_v55 }
 0x4e6   :  { %v1169_v56 = vpop.f32.mrb[8].mxu0 }
 0x4e7   :  { %v1171_v17 = vpop.f32.mrb[9].mxu0 }
 0x4e8   :  { %v1173_v57 = vpop.f32.mrb[10].mxu0 }
 0x4e9   :  { %v1174_v31 = vpop.f32.mrb[11].mxu0 }
 0x4ec   :  { %v1210_v23 = vpop.f32.mrb[4].mxu1 }
 0x4ed   :  { %v1212_v58 = vpop.f32.mrb[5].mxu1 }
 0x4ee   :  { %v1214_v49 = vpop.f32.mrb[6].mxu1 }
 0x4ef   :  { %v1215_v27 = vpop.f32.mrb[7].mxu1 }
 0x4f0   :  { %1886 = shalt.err (!%p1883_p10)
}
 0x4f1   :  { %s1887_s2 = scalar_lea.hbm %s2426_s13, 128 }
 0x4f2   :  { %p1888_p11 = scmp.ne.s32.totalorder %s2426_s13, %s1887_s2  ;;  %p1891_p12 = scmp.lt.u32.totalorder %s1887_s2, %s2426_s13 }
 0x4f4   :  { %p1893_p13 = pnand %p1891_p12, %p1888_p11 }
 0x4f6   :  { %1896 = shalt.err (!%p1893_p13)
}
 0x4f7   :  { %1457 = dma.vmem_to_hbm [thread:$0]  %s1455_s16, 128, %s2426_s13, [#allocation18]   ;;  %v1366_v0 = vld [vmem:[%s2422_s9] sm:$0xf]  ;;  %v122_v24 = vld [vmem:[#allocation5] sm:$0xff] }
 0x4f8   :  { %v1371_v59 = vrot.slane %v1366_v0, %v2202_v47  ;;  %v1375_v7 = vrot.slane %v1366_v0, %v2238_v1  ;;  %v1383_v63 = vrot.slane %v1366_v0, %v2244_v3  ;;  %v1379_v1 = vrot.slane %v1366_v0, %v2241_v2  ;;  %s1994_s9 = smov [#allocation14]   ;;  %s1995_s4 = smov [#allocation16]  }
 0x4f9   :  { %s1434_s13 = sshll.u32 %s1994_s9, 4  ;;  %s1444_s30 = sshll.u32 %s1995_s4, 4  ;;  %s1435_s13 = int_to_ptr.vmem [resolvable:$true] %s1434_s13  ;;  %s1445_s30 = int_to_ptr.vmem [resolvable:$true] %s1444_s30 }
 0x4fa   :  { %s1897_s5 = scalar_lea.vmem %s1435_s13, 128  ;;  %p1902_p1 = scmp.lt.s32.totalorder %s1435_s13, %s1435_s13 }
 0x4fb   :  { %p1898_p0 = scmp.ne.s32.totalorder %s1435_s13, %s1897_s5  ;;  %p1903_p2 = scmp.lt.s32.totalorder %s1897_s5, %s1897_s5 }
 0x4fd   :  { %p1904_p3 = por %p1903_p2, %p1902_p1 }
 0x4ff   :  { %p1905_p4 = pnand %p1904_p3, %p1898_p0 }
 0x579   :  { %v1318_v60 = vpop.f32.mrb[12].mxu0 }
 0x57a   :  { %v1319_v61 = vadd.f32 %v1318_v60, %v1169_v56  ;;  %v1320_v8 = vpop.f32.mrb[13].mxu0 }
 0x57b   :  { %v1321_v37 = vadd.f32 %v1320_v8, %v1171_v17  ;;  %v1322_v32 = vpop.f32.mrb[14].mxu0 }
 0x57c   :  { %v1388_v40 = vadd.f32 %v1371_v59, %v1319_v61  ;;  %v1323_v50 = vpop.f32.mrb[15].mxu0 }
 0x57d   :  { %v1389_v18 = vadd.f32 %v1375_v7, %v1321_v37 }
 0x57e   :  { %v1545_v62 = vmul.f32 -1.442695, %v1388_v40 }
 0x57f   :  { %v1546_v51 = vmul.f32 -1.442695, %v1389_v18 }
 0x580   :  { %1727 = vpow2.f32 %v1545_v62 }
 0x581   :  { %1729 = vpow2.f32 %v1546_v51  ;;  %v1359_v10 = vpop.f32.mrb[16].mxu0 }
 0x582   :  { %v1360_v4 = vadd.f32 %v1359_v10, %v1210_v23  ;;  %v1361_v5 = vpop.f32.mrb[17].mxu0 }
 0x583   :  { %v1362_v47 = vadd.f32 %v1361_v5, %v1212_v58  ;;  %v1363_v6 = vpop.f32.mrb[18].mxu0 }
 0x584   :  { %v1364_v11 = vpop.f32.mrb[19].mxu0  ;;  %v1390_v16 = vadd.f32 %v1379_v1, %v1360_v4 }
 0x585   :  { %v1391_v9 = vadd.f32 %v1383_v63, %v1362_v47 }
 0x587   :  { %v1547_v15 = vmul.f32 -1.442695, %v1391_v9 }
 0x589   :  { %1731 = vpow2.f32 %v1547_v15 }
 0x58a   :  { %v1728_v19 = vpop.eup %1727  ;;  %1733 = vtanh.f32 %v1390_v16 }
 0x58b   :  { %v1730_v20 = vpop.eup %1729  ;;  %v1395_v12 = vadd.f32 1.0, %v1728_v19 }
 0x58c   :  { %v1401_v21 = vadd.f32 1.0, %v1730_v20 }
 0x58d   :  { %1735 = vrcp.f32 %v1395_v12 }
 0x58e   :  { %1737 = vrcp.f32 %v1401_v21 }
 0x593   :  { %v1732_v22 = vpop.eup %1731 }
 0x594   :  { %v1734_v3 = vpop.eup %1733  ;;  %v1408_v28 = vadd.f32 1.0, %v1732_v22 }
 0x596   :  { %1739 = vrcp.f32 %v1408_v28 }
 0x597   :  { %v1736_v25 = vpop.eup %1735 }
 0x598   :  { %v1738_v26 = vpop.eup %1737  ;;  %v1412_v29 = vmul.f32 %v1736_v25, %v1734_v3 }
 0x599   :  { %v1411_v2 = vmul.f32 %v1738_v26, %v122_v24 }
 0x59b   :  { %v1413_v30 = vadd.f32 %v1412_v29, %v1411_v2 }
 0x59d   :  { %1741 = vtanh.f32 %v1413_v30  ;;  %1417 = vst [vmem:[#allocation14] sm:$0xff] %v1413_v30 }
 0x59e   :  { %1908 = shalt.err (!%p1905_p4)
}
 0x59f   :  { %s1909_s29 = scalar_lea.hbm %s2424_s11, 128 }
 0x5a0   :  { %p1910_p5 = scmp.ne.s32.totalorder %s2424_s11, %s1909_s29  ;;  %p1913_p6 = scmp.lt.u32.totalorder %s1909_s29, %s2424_s11 }
 0x5a2   :  { %p1915_p7 = pnand %p1913_p6, %p1910_p5 }
 0x5a4   :  { %1918 = shalt.err (!%p1915_p7)
}
 0x5a5   :  { %1437 = dma.vmem_to_hbm [thread:$0]  %s1435_s13, 128, %s2424_s11, [#allocation15]  }
 0x5a6   :  { %s1919_s3 = scalar_lea.vmem %s1445_s30, 128  ;;  %p1924_p9 = scmp.lt.s32.totalorder %s1445_s30, %s1445_s30 }
 0x5a7   :  { %p1920_p8 = scmp.ne.s32.totalorder %s1445_s30, %s1919_s3  ;;  %p1925_p10 = scmp.lt.s32.totalorder %s1919_s3, %s1919_s3 }
 0x5a9   :  { %p1926_p11 = por %p1925_p10, %p1924_p9 }
 0x5ab   :  { %p1927_p12 = pnand %p1926_p11, %p1920_p8 }
 0x5ad   :  { %1930 = shalt.err (!%p1927_p12)
}
 0x5ae   :  { %s1931_s19 = scalar_lea.hbm %s2425_s12, 128 }
 0x5af   :  { %p1932_p13 = scmp.ne.s32.totalorder %s2425_s12, %s1931_s19  ;;  %p1935_p0 = scmp.lt.u32.totalorder %s1931_s19, %s2425_s12 }
 0x5b1   :  { %p1937_p1 = pnand %p1935_p0, %p1932_p13 }
 0x5b3   :  { %1940 = shalt.err (!%p1937_p1)
}
 0x5b4   :  { %1447 = dma.vmem_to_hbm [thread:$0]  %s1445_s30, 128, %s2425_s12, [#allocation15]   ;;  %v1740_v33 = vpop.eup %1739 }
 0x5b5   :  { %s1996_s0 = smov [#allocation13]   ;;  %v1742_v34 = vpop.eup %1741 }
 0x5b6   :  { %s1424_s18 = sshll.u32 %s1996_s0, 4  ;;  %v1415_v35 = vmul.f32 %v1742_v34, %v1740_v33  ;;  %s1425_s18 = int_to_ptr.vmem [resolvable:$true] %s1424_s18 }
 0x5b7   :  { %s1941_s24 = scalar_lea.vmem %s1425_s18, 128  ;;  %p1946_p3 = scmp.lt.s32.totalorder %s1425_s18, %s1425_s18 }
 0x5b8   :  { %1416 = vst [vmem:[#allocation13] sm:$0xff] %v1415_v35  ;;  %p1942_p2 = scmp.ne.s32.totalorder %s1425_s18, %s1941_s24  ;;  %p1947_p4 = scmp.lt.s32.totalorder %s1941_s24, %s1941_s24 }
 0x5ba   :  { %p1948_p5 = por %p1947_p4, %p1946_p3 }
 0x5bc   :  { %p1949_p6 = pnand %p1948_p5, %p1942_p2 }
 0x5be   :  { %1952 = shalt.err (!%p1949_p6)
}
 0x5bf   :  { %s1953_s9 = scalar_lea.hbm %s2423_s10, 128 }
 0x5c0   :  { %p1954_p7 = scmp.ne.s32.totalorder %s2423_s10, %s1953_s9  ;;  %p1957_p8 = scmp.lt.u32.totalorder %s1953_s9, %s2423_s10 }
 0x5c2   :  { %p1959_p9 = pnand %p1957_p8, %p1954_p7 }
 0x5c4   :  { %1962 = shalt.err (!%p1959_p9)
}
 0x5c5   :  { %1427 = dma.vmem_to_hbm [thread:$0]  %s1425_s18, 128, %s2423_s10, [#allocation4]  }
 0x5c6   :  { %1971 = dma.done.wait [#allocation4], 128  }
 0x5c7   :  { %1972 = vsyncadd [#allocation4], 4294967168 }
 0x5c8   :  { %1973 = dma.done.wait [#allocation15], 256  }
 0x5c9   :  { %1974 = vsyncadd [#allocation15], 4294967040 }
 0x5ca   :  { %1975 = dma.done.wait [#allocation18], 128  }
 0x5cb   :  { %1976 = vsyncadd [#allocation18], 4294967168 }
 0x5cc   :  { %1470 = vsyncpa [#allocation3], 1 }
 0x5cd   :  { %1471 = vsyncpa [#allocation6], 1 }
 0x5ce   :  { %1472 = vsyncpa [#allocation9], 1 }
 0x5cf   :  { %1473 = vsyncpa [#allocation12], 1 }
 0x5d0   :  { %1474 = vsyncpa [#allocation4], 1 }
 0x5d1   :  { %1475 = vsyncpa [#allocation15], 1 }
 0x5d2   :  { %1476 = vsyncpa [#allocation18], 1 }

</bundles_post_ra>
